<compile_context>
chip_gen: v7x
topology: tpu7x:2x2x1
jax: 0.10.0
libtpu: 0.0.40
codegen_flags: <defaults>
</compile_context>

<pallas_src>
import functools

import jax
import jax.numpy as jnp
import numpy as np
from jax import lax
from jax.experimental import pallas as pl
from jax.experimental.pallas import tpu as pltpu

EPS = 1e-5
ACT_DTYPE = jnp.bfloat16   # inter-layer activations & MXU operands (f32 accumulate)


# ----------------------------------------------------------------------------
# Pallas kernels
# ----------------------------------------------------------------------------
def _conv_bias_kernel(x_ref, w_ref, b_ref, o_ref, *, apply_sigmoid):
    # (Cout, K) @ (K, tHW) on the MXU, f32 accumulation.
    y = jnp.dot(w_ref[...], x_ref[0], preferred_element_type=jnp.float32)
    y = y + b_ref[...]                     # (Cout, 1) broadcasts over lanes
    if apply_sigmoid:
        y = jax.nn.sigmoid(y)
    # LeakyReLU(negative_slope=1.0) is the identity -> no activation emitted.
    o_ref[0] = y.astype(o_ref.dtype)


def _conv_instnorm_fused_kernel(x_ref, w_ref, o_ref, *, eps):
    # Whole-sample tile: conv matmul + InstanceNorm2d (biased var, no affine).
    # Conv bias omitted: a per-channel constant is cancelled by the mean sub.
    y = jnp.dot(w_ref[...], x_ref[0], preferred_element_type=jnp.float32)
    inv_hw = 1.0 / y.shape[1]
    mean = jnp.sum(y, axis=1, keepdims=True) * inv_hw
    ex2 = jnp.sum(y * y, axis=1, keepdims=True) * inv_hw
    var = jnp.maximum(ex2 - mean * mean, 0.0)
    o_ref[0] = ((y - mean) * lax.rsqrt(var + eps)).astype(o_ref.dtype)


def _conv_stats_kernel(x_ref, w_ref, y_ref, s1_ref, s2_ref):
    # Pass 1 of the tiled InstanceNorm path: matmul + per-channel sum / sumsq
    # accumulated across the HW grid axis (marked "arbitrary").
    h = pl.program_id(1)

    @pl.when(h == 0)
    def _():
        s1_ref[...] = jnp.zeros_like(s1_ref)
        s2_ref[...] = jnp.zeros_like(s2_ref)

    y = jnp.dot(w_ref[...], x_ref[0], preferred_element_type=jnp.float32)
    y_ref[0] = y.astype(y_ref.dtype)
    s1_ref[0] = s1_ref[0] + jnp.sum(y, axis=1, keepdims=True)
    s2_ref[0] = s2_ref[0] + jnp.sum(y * y, axis=1, keepdims=True)


def _norm_apply_kernel(y_ref, s1_ref, s2_ref, o_ref, *, hw_total, eps):
    # Pass 2: normalize each HW tile with the per-sample channel stats.
    y = y_ref[0]
    inv_hw = 1.0 / hw_total
    mean = s1_ref[0] * inv_hw
    ex2 = s2_ref[0] * inv_hw
    var = jnp.maximum(ex2 - mean * mean, 0.0)
    o_ref[0] = ((y - mean) * lax.rsqrt(var + eps)).astype(o_ref.dtype)


def _final_kernel(x_ref, w_ref, b_ref, o_ref):
    # One batched (N, K) @ (K, Cout) matmul + bias + sigmoid.
    y = jnp.dot(x_ref[...], w_ref[...], preferred_element_type=jnp.float32)
    o_ref[...] = jax.nn.sigmoid(y + b_ref[...]).astype(o_ref.dtype)


# ----------------------------------------------------------------------------
# pallas_call wrappers
# ----------------------------------------------------------------------------
def _pick_hw_tile(hw, cap):
    """Largest multiple-of-128 tile <= cap that divides hw, else the full hw."""
    cap = max(cap, 128)
    if hw <= cap:
        return hw
    t = (cap // 128) * 128
    while t > 128 and hw % t != 0:
        t -= 128
    return t if (t >= 128 and hw % t == 0) else hw


def conv_bias_act_pallas(patches, w, b, *, apply_sigmoid, out_dtype, hw_tile_cap):
    """patches (N,K,HW) bf16, w (Cout,K) bf16, b (Cout,1) f32 -> (N,Cout,HW)."""
    N, K, HW = patches.shape
    Cout = w.shape[0]
    t = _pick_hw_tile(HW, hw_tile_cap)
    kernel = functools.partial(_conv_bias_kernel, apply_sigmoid=apply_sigmoid)
    return pl.pallas_call(
        kernel,
        out_shape=jax.ShapeDtypeStruct((N, Cout, HW), out_dtype),
        grid_spec=pltpu.PrefetchScalarGridSpec(
            num_scalar_prefetch=0,
            grid=(N, HW // t),
            in_specs=[
                pl.BlockSpec((1, K, t), lambda n, h: (n, 0, h)),
                pl.BlockSpec((Cout, K), lambda n, h: (0, 0)),
                pl.BlockSpec((Cout, 1), lambda n, h: (0, 0)),
            ],
            out_specs=pl.BlockSpec((1, Cout, t), lambda n, h: (n, 0, h)),
        ),
        compiler_params=pltpu.CompilerParams(
            dimension_semantics=("parallel", "parallel")),
    )(patches, w, b)


def conv_instnorm_pallas(patches, w, *, hw_tile_cap, eps=EPS):
    """Conv (no bias) + InstanceNorm2d.  (N,K,HW), (Cout,K) -> (N,Cout,HW)."""
    N, K, HW = patches.shape
    Cout = w.shape[0]
    t = _pick_hw_tile(HW, hw_tile_cap)
    n_hw = HW // t

    if n_hw == 1:
        # Single-tile: fully fused matmul + norm (one pass over the output).
        kernel = functools.partial(_conv_instnorm_fused_kernel, eps=eps)
        return pl.pallas_call(
            kernel,
            out_shape=jax.ShapeDtypeStruct((N, Cout, HW), ACT_DTYPE),
            grid_spec=pltpu.PrefetchScalarGridSpec(
                num_scalar_prefetch=0,
                grid=(N,),
                in_specs=[
                    pl.BlockSpec((1, K, HW), lambda n: (n, 0, 0)),
                    pl.BlockSpec((Cout, K), lambda n: (0, 0)),
                ],
                out_specs=pl.BlockSpec((1, Cout, HW), lambda n: (n, 0, 0)),
            ),
            compiler_params=pltpu.CompilerParams(
                dimension_semantics=("parallel",)),
        )(patches, w)

    # Two-pass: (1) matmul + stats accumulation, (2) normalization sweep.
    y, s1, s2 = pl.pallas_call(
        _conv_stats_kernel,
        out_shape=(
            jax.ShapeDtypeStruct((N, Cout, HW), ACT_DTYPE),
            jax.ShapeDtypeStruct((N, Cout, 1), jnp.float32),
            jax.ShapeDtypeStruct((N, Cout, 1), jnp.float32),
        ),
        grid_spec=pltpu.PrefetchScalarGridSpec(
            num_scalar_prefetch=0,
            grid=(N, n_hw),
            in_specs=[
                pl.BlockSpec((1, K, t), lambda n, h: (n, 0, h)),
                pl.BlockSpec((Cout, K), lambda n, h: (0, 0)),
            ],
            out_specs=(
                pl.BlockSpec((1, Cout, t), lambda n, h: (n, 0, h)),
                pl.BlockSpec((1, Cout, 1), lambda n, h: (n, 0, 0)),
                pl.BlockSpec((1, Cout, 1), lambda n, h: (n, 0, 0)),
            ),
        ),
        compiler_params=pltpu.CompilerParams(
            dimension_semantics=("parallel", "arbitrary")),
    )(patches, w)

    kernel = functools.partial(_norm_apply_kernel, hw_total=HW, eps=eps)
    return pl.pallas_call(
        kernel,
        out_shape=jax.ShapeDtypeStruct((N, Cout, HW), ACT_DTYPE),
        grid_spec=pltpu.PrefetchScalarGridSpec(
            num_scalar_prefetch=0,
            grid=(N, n_hw),
            in_specs=[
                pl.BlockSpec((1, Cout, t), lambda n, h: (n, 0, h)),
                pl.BlockSpec((1, Cout, 1), lambda n, h: (n, 0, 0)),
                pl.BlockSpec((1, Cout, 1), lambda n, h: (n, 0, 0)),
            ],
            out_specs=pl.BlockSpec((1, Cout, t), lambda n, h: (n, 0, h)),
        ),
        compiler_params=pltpu.CompilerParams(
            dimension_semantics=("parallel", "parallel")),
    )(y, s1, s2)


def final_conv_sigmoid_pallas(x_flat, w_kc, b_row):
    """x_flat (N,K) bf16, w_kc (K,Cout) bf16, b_row (1,Cout) f32 -> (N,Cout) f32."""
    N, _ = x_flat.shape
    Cout = w_kc.shape[1]
    return pl.pallas_call(
        _final_kernel,
        out_shape=jax.ShapeDtypeStruct((N, Cout), jnp.float32),
    )(x_flat, w_kc, b_row)


# ----------------------------------------------------------------------------
# Gather-free patch extraction (NCHW, strided slices only; XLA glue)
# ----------------------------------------------------------------------------
def extract_patches_nchw(x, k, stride, pad):
    """x (N,C,H,W) -> patches (N, k*k*C, Ho*Wo); K order = (kh, kw, cin)."""
    N, C, H, W = x.shape
    if pad:
        x = jnp.pad(x, ((0, 0), (0, 0), (pad, pad), (pad, pad)))
    Hp, Wp = H + 2 * pad, W + 2 * pad
    Ho = (Hp - k) // stride + 1
    Wo = (Wp - k) // stride + 1
    taps = []
    for dh in range(k):
        for dw in range(k):
            t = lax.slice(
                x,
                (0, 0, dh, dw),
                (N, C, dh + (Ho - 1) * stride + 1, dw + (Wo - 1) * stride + 1),
                (1, 1, stride, stride),
            )                                           # (N, C, Ho, Wo)
            taps.append(t.reshape(N, C, Ho * Wo))
    patches = jnp.concatenate(taps, axis=1)             # (N, k*k*C, Ho*Wo)
    return patches, Ho, Wo


# ----------------------------------------------------------------------------
# Discriminator configuration / parameters / forward
# ----------------------------------------------------------------------------
def make_layer_cfgs(input_nc, ndf):
    # (Cin, Cout, stride, pad, instance_norm, activation)
    cfgs = [(input_nc, ndf, 2, 1, False, "leaky")]
    for i in range(3):
        mult = 2 ** i
        cfgs.append((ndf * mult, ndf * mult * 2, 2, 1, True, "leaky"))
    cfgs.append((ndf * 8, 1, 1, 0, False, "sigmoid"))
    return cfgs


def init_params(key, cfgs):
    params = []
    for (cin, cout, _, _, _, _) in cfgs:
        key, kw, kb = jax.random.split(key, 3)
        w = jax.random.normal(kw, (cout, cin, 4, 4), jnp.float32) * 0.05  # OIHW
        b = jax.random.normal(kb, (cout,), jnp.float32) * 0.01
        params.append((w, b))
    return params


def discriminator_forward(params, cfgs, x_nchw, *, hw_tile_cap=512):
    x = x_nchw.astype(ACT_DTYPE)
    for (w, b), (cin, cout, stride, pad, do_norm, act) in zip(params, cfgs):
        N = x.shape[0]
        patches, Ho, Wo = extract_patches_nchw(x, 4, stride, pad)  # (N, K, Ho*Wo)
        K = cin * 16
        # OIHW -> (Cout, kh, kw, Cin) flattened: matches patch K order.
        w2d = w.transpose(0, 2, 3, 1).reshape(cout, K).astype(ACT_DTYPE)

        if do_norm:
            # Bias dropped: cancelled exactly by affine-less InstanceNorm.
            y = conv_instnorm_pallas(patches, w2d, hw_tile_cap=hw_tile_cap)
        elif act == "sigmoid" and Ho * Wo == 1:
            # Final 4x4 VALID conv: single batched matmul, N on sublanes.
            y = final_conv_sigmoid_pallas(
                patches[:, :, 0], w2d.T,
                b.reshape(1, cout).astype(jnp.float32))
            y = y.reshape(N, cout, 1)
        else:
            y = conv_bias_act_pallas(
                patches, w2d, b.reshape(cout, 1).astype(jnp.float32),
                apply_sigmoid=(act == "sigmoid"),
                out_dtype=jnp.float32 if act == "sigmoid" else ACT_DTYPE,
                hw_tile_cap=hw_tile_cap)
        # LeakyReLU(negative_slope=1.0) == identity: intentionally skipped.
        x = y.reshape(N, cout, Ho, Wo)   # free reshape: already NCHW-flat
    return x.astype(jnp.float32)


# ----------------------------------------------------------------------------
# Pure-JAX f32 reference (sanity check)
# ----------------------------------------------------------------------------
def reference_forward(params, cfgs, x_nchw):
    x = x_nchw
    for (w, b), (cin, cout, stride, pad, do_norm, act) in zip(params, cfgs):
        y = lax.conv_general_dilated(
            x, w, window_strides=(stride, stride),
            padding=[(pad, pad), (pad, pad)],
            dimension_numbers=("NCHW", "OIHW", "NCHW"),
        ) + b[None, :, None, None]
        if do_norm:
            m = y.mean(axis=(2, 3), keepdims=True)
            v = ((y - m) ** 2).mean(axis=(2, 3), keepdims=True)
            y = (y - m) / jnp.sqrt(v + EPS)
        if act == "leaky":
            y = jnp.where(y >= 0, y, 1.0 * y)   # slope == 1.0 -> identity
        else:
            y = jax.nn.sigmoid(y)
        x = y
    return x


if __name__ == "__main__":
    # Small but valid shapes: the final 4x4 VALID conv needs spatial >= 64 at
    # the input (64 -> 32 -> 16 -> 8 -> 4 -> 1).
    batch, input_nc, ndf, spatial = 2, 3, 8, 64

    key = jax.random.PRNGKey(0)
    key, kx = jax.random.split(key)
    x = jax.random.normal(kx, (batch, input_nc, spatial, spatial), jnp.float32)

    cfgs = make_layer_cfgs(input_nc, ndf)
    params = init_params(key, cfgs)

    # hw_tile_cap=128 exercises both the tiled two-pass InstanceNorm path
    # (layers with HW > 128) and the fused single-tile path (smaller layers).
    fwd = jax.jit(lambda p, xx: discriminator_forward(p, cfgs, xx, hw_tile_cap=128))
    out = jax.block_until_ready(fwd(params, x))

    ref = jax.block_until_ready(reference_forward(params, cfgs, x))
    # bf16 MXU operands / bf16 inter-layer activations vs f32 reference.
    np.testing.assert_allclose(np.asarray(out), np.asarray(ref),
                               rtol=3e-2, atol=3e-2)
    assert out.shape == (batch, 1, 1, 1)
    print("KERNEL_OK")
</pallas_src>

<mosaic_0001>
module attributes {stable_mosaic.version = 11 : i64} {
  func.func @_conv_bias_kernel(%arg0: i32, %arg1: i32, %arg2: memref<1x48x128xbf16, #tpu.memory_space<vmem>>, %arg3: memref<8x48xbf16, #tpu.memory_space<vmem>>, %arg4: memref<8x1xf32, #tpu.memory_space<vmem>>, %arg5: memref<1x8x128xbf16, #tpu.memory_space<vmem>>) attributes {dimension_semantics = [#tpu.dimension_semantics<parallel>, #tpu.dimension_semantics<parallel>], iteration_bounds = array<i64: 2, 8>, scalar_prefetch = 0 : i64, scratch_operands = 0 : i64, tpu.core_type = #tpu.core_type<tc>, window_params = [{transform_indices = @transform_0, window_bounds = array<i64: 1, 48, 128>}, {pipeline_mode = #tpu.pipeline_mode<synchronous>, transform_indices = @transform_1, window_bounds = array<i64: 8, 48>}, {pipeline_mode = #tpu.pipeline_mode<synchronous>, transform_indices = @transform_2, window_bounds = array<i64: 8, 1>}, {transform_indices = @transform_3, window_bounds = array<i64: 1, 8, 128>}]} {
    %c0 = arith.constant 0 : index
    %c0_0 = arith.constant 0 : index
    %0 = vector.load %arg3[%c0, %c0_0] : memref<8x48xbf16, #tpu.memory_space<vmem>>, vector<8x48xbf16>
    %c0_1 = arith.constant 0 : index
    %c0_2 = arith.constant 0 : index
    %c0_3 = arith.constant 0 : index
    %1 = vector.load %arg2[%c0_1, %c0_2, %c0_3] : memref<1x48x128xbf16, #tpu.memory_space<vmem>>, vector<1x48x128xbf16>
    %2 = vector.shape_cast %1 : vector<1x48x128xbf16> to vector<48x128xbf16>
    %cst = arith.constant dense<0.000000e+00> : vector<8x128xf32>
    %3 = tpu.matmul %0, %2, %cst {dimension_numbers = #tpu.dot_dimension_numbers<[1], [0], [0], [1], [0, 0, 1, 1], [], []>} : vector<8x48xbf16>, vector<48x128xbf16>, vector<8x128xf32> -> vector<8x128xf32>
    %c0_4 = arith.constant 0 : index
    %c0_5 = arith.constant 0 : index
    %4 = vector.load %arg4[%c0_4, %c0_5] : memref<8x1xf32, #tpu.memory_space<vmem>>, vector<8x1xf32>
    %5 = vector.broadcast %4 : vector<8x1xf32> to vector<8x128xf32>
    %6 = arith.addf %3, %5 : vector<8x128xf32>
    %7 = arith.truncf %6 : vector<8x128xf32> to vector<8x128xbf16>
    %c0_6 = arith.constant 0 : index
    %c0_7 = arith.constant 0 : index
    %c0_8 = arith.constant 0 : index
    %8 = vector.load %arg5[%c0_6, %c0_7, %c0_8] : memref<1x8x128xbf16, #tpu.memory_space<vmem>>, vector<1x8x128xbf16>
    %9 = vector.shape_cast %8 : vector<1x8x128xbf16> to vector<8x128xbf16>
    %10 = vector.shape_cast %7 : vector<8x128xbf16> to vector<1x8x128xbf16>
    tpu.vector_store %arg5[%c0_6, %c0_7, %c0_8], %10 {strides = array<i32>} : memref<1x8x128xbf16, #tpu.memory_space<vmem>>, vector<1x8x128xbf16>,
    return
  }
  func.func @transform_0(%arg0: i32, %arg1: i32) -> (i32, i32, i32) {
    %c0_i32 = arith.constant 0 : i32
    %c0_i32_0 = arith.constant 0 : i32
    return %arg0, %c0_i32, %arg1 : i32, i32, i32
  }
  func.func @transform_1(%arg0: i32, %arg1: i32) -> (i32, i32) {
    %c0_i32 = arith.constant 0 : i32
    %c0_i32_0 = arith.constant 0 : i32
    %c0_i32_1 = arith.constant 0 : i32
    return %c0_i32, %c0_i32_0 : i32, i32
  }
  func.func @transform_2(%arg0: i32, %arg1: i32) -> (i32, i32) {
    %c0_i32 = arith.constant 0 : i32
    %c0_i32_0 = arith.constant 0 : i32
    %c0_i32_1 = arith.constant 0 : i32
    return %c0_i32, %c0_i32_0 : i32, i32
  }
  func.func @transform_3(%arg0: i32, %arg1: i32) -> (i32, i32, i32) {
    %c0_i32 = arith.constant 0 : i32
    %c0_i32_0 = arith.constant 0 : i32
    return %arg0, %c0_i32, %arg1 : i32, i32, i32
  }
}

module attributes {stable_mosaic.version = 11 : i64} {
  func.func @_conv_stats_kernel(%arg0: i32, %arg1: i32, %arg2: memref<1x128x128xbf16, #tpu.memory_space<vmem>>, %arg3: memref<16x128xbf16, #tpu.memory_space<vmem>>, %arg4: memref<1x16x128xbf16, #tpu.memory_space<vmem>>, %arg5: memref<1x16x1xf32, #tpu.memory_space<vmem>>, %arg6: memref<1x16x1xf32, #tpu.memory_space<vmem>>) attributes {dimension_semantics = [#tpu.dimension_semantics<parallel>, #tpu.dimension_semantics<arbitrary>], iteration_bounds = array<i64: 2, 2>, scalar_prefetch = 0 : i64, scratch_operands = 0 : i64, tpu.core_type = #tpu.core_type<tc>, window_params = [{transform_indices = @transform_0, window_bounds = array<i64: 1, 128, 128>}, {pipeline_mode = #tpu.pipeline_mode<synchronous>, transform_indices = @transform_1, window_bounds = array<i64: 16, 128>}, {transform_indices = @transform_2, window_bounds = array<i64: 1, 16, 128>}, {transform_indices = @transform_3, window_bounds = array<i64: 1, 16, 1>}, {transform_indices = @transform_4, window_bounds = array<i64: 1, 16, 1>}]} {
    %c0_i32 = arith.constant 0 : i32
    %0 = arith.cmpi eq, %arg1, %c0_i32 : i32
    %1 = arith.extui %0 : i1 to i32
    %c0_i32_0 = arith.constant 0 : i32
    %2 = arith.cmpi ne, %1, %c0_i32_0 : i32
    scf.if %2 {
      %cst_22 = arith.constant 0.000000e+00 : f32
      %28 = vector.broadcast %cst_22 : f32 to vector<1x16x1xf32>
      %c0_23 = arith.constant 0 : index
      %c0_24 = arith.constant 0 : index
      %c0_25 = arith.constant 0 : index
      %29 = vector.load %arg5[%c0_23, %c0_24, %c0_25] : memref<1x16x1xf32, #tpu.memory_space<vmem>>, vector<1x16x1xf32>
      tpu.vector_store %arg5[%c0_23, %c0_24, %c0_25], %28 {strides = array<i32>} : memref<1x16x1xf32, #tpu.memory_space<vmem>>, vector<1x16x1xf32>,
      %cst_26 = arith.constant 0.000000e+00 : f32
      %30 = vector.broadcast %cst_26 : f32 to vector<1x16x1xf32>
      %c0_27 = arith.constant 0 : index
      %c0_28 = arith.constant 0 : index
      %c0_29 = arith.constant 0 : index
      %31 = vector.load %arg6[%c0_27, %c0_28, %c0_29] : memref<1x16x1xf32, #tpu.memory_space<vmem>>, vector<1x16x1xf32>
      tpu.vector_store %arg6[%c0_27, %c0_28, %c0_29], %30 {strides = array<i32>} : memref<1x16x1xf32, #tpu.memory_space<vmem>>, vector<1x16x1xf32>,
    } else {
    }
    %c0 = arith.constant 0 : index
    %c0_1 = arith.constant 0 : index
    %3 = vector.load %arg3[%c0, %c0_1] : memref<16x128xbf16, #tpu.memory_space<vmem>>, vector<16x128xbf16>
    %c0_2 = arith.constant 0 : index
    %c0_3 = arith.constant 0 : index
    %c0_4 = arith.constant 0 : index
    %4 = vector.load %arg2[%c0_2, %c0_3, %c0_4] : memref<1x128x128xbf16, #tpu.memory_space<vmem>>, vector<1x128x128xbf16>
    %5 = vector.shape_cast %4 : vector<1x128x128xbf16> to vector<128x128xbf16>
    %cst = arith.constant dense<0.000000e+00> : vector<16x128xf32>
    %6 = tpu.matmul %3, %5, %cst {dimension_numbers = #tpu.dot_dimension_numbers<[1], [0], [0], [1], [0, 0, 1, 1], [], []>} : vector<16x128xbf16>, vector<128x128xbf16>, vector<16x128xf32> -> vector<16x128xf32>
    %7 = arith.truncf %6 : vector<16x128xf32> to vector<16x128xbf16>
    %c0_5 = arith.constant 0 : index
    %c0_6 = arith.constant 0 : index
    %c0_7 = arith.constant 0 : index
    %8 = vector.load %arg4[%c0_5, %c0_6, %c0_7] : memref<1x16x128xbf16, #tpu.memory_space<vmem>>, vector<1x16x128xbf16>
    %9 = vector.shape_cast %8 : vector<1x16x128xbf16> to vector<16x128xbf16>
    %10 = vector.shape_cast %7 : vector<16x128xbf16> to vector<1x16x128xbf16>
    tpu.vector_store %arg4[%c0_5, %c0_6, %c0_7], %10 {strides = array<i32>} : memref<1x16x128xbf16, #tpu.memory_space<vmem>>, vector<1x16x128xbf16>,
    %c0_8 = arith.constant 0 : index
    %c0_9 = arith.constant 0 : index
    %c0_10 = arith.constant 0 : index
    %11 = vector.load %arg5[%c0_8, %c0_9, %c0_10] : memref<1x16x1xf32, #tpu.memory_space<vmem>>, vector<1x16x1xf32>
    %12 = vector.shape_cast %11 : vector<1x16x1xf32> to vector<16x1xf32>
    %cst_11 = arith.constant dense<0.000000e+00> : vector<16xf32>
    %13 = vector.multi_reduction <add>, %6, %cst_11 [1] : vector<16x128xf32> to vector<16xf32>
    %14 = vector.shape_cast %13 : vector<16xf32> to vector<16x1xf32>
    %15 = arith.addf %12, %14 : vector<16x1xf32>
    %c0_12 = arith.constant 0 : index
    %c0_13 = arith.constant 0 : index
    %c0_14 = arith.constant 0 : index
    %16 = vector.load %arg5[%c0_12, %c0_13, %c0_14] : memref<1x16x1xf32, #tpu.memory_space<vmem>>, vector<1x16x1xf32>
    %17 = vector.shape_cast %16 : vector<1x16x1xf32> to vector<16x1xf32>
    %18 = vector.shape_cast %15 : vector<16x1xf32> to vector<1x16x1xf32>
    tpu.vector_store %arg5[%c0_12, %c0_13, %c0_14], %18 {strides = array<i32>} : memref<1x16x1xf32, #tpu.memory_space<vmem>>, vector<1x16x1xf32>,
    %c0_15 = arith.constant 0 : index
    %c0_16 = arith.constant 0 : index
    %c0_17 = arith.constant 0 : index
    %19 = vector.load %arg6[%c0_15, %c0_16, %c0_17] : memref<1x16x1xf32, #tpu.memory_space<vmem>>, vector<1x16x1xf32>
    %20 = vector.shape_cast %19 : vector<1x16x1xf32> to vector<16x1xf32>
    %21 = arith.mulf %6, %6 : vector<16x128xf32>
    %cst_18 = arith.constant dense<0.000000e+00> : vector<16xf32>
    %22 = vector.multi_reduction <add>, %21, %cst_18 [1] : vector<16x128xf32> to vector<16xf32>
    %23 = vector.shape_cast %22 : vector<16xf32> to vector<16x1xf32>
    %24 = arith.addf %20, %23 : vector<16x1xf32>
    %c0_19 = arith.constant 0 : index
    %c0_20 = arith.constant 0 : index
    %c0_21 = arith.constant 0 : index
    %25 = vector.load %arg6[%c0_19, %c0_20, %c0_21] : memref<1x16x1xf32, #tpu.memory_space<vmem>>, vector<1x16x1xf32>
    %26 = vector.shape_cast %25 : vector<1x16x1xf32> to vector<16x1xf32>
    %27 = vector.shape_cast %24 : vector<16x1xf32> to vector<1x16x1xf32>
    tpu.vector_store %arg6[%c0_19, %c0_20, %c0_21], %27 {strides = array<i32>} : memref<1x16x1xf32, #tpu.memory_space<vmem>>, vector<1x16x1xf32>,
    return
  }
  func.func @transform_0(%arg0: i32, %arg1: i32) -> (i32, i32, i32) {
    %c0_i32 = arith.constant 0 : i32
    %c0_i32_0 = arith.constant 0 : i32
    return %arg0, %c0_i32, %arg1 : i32, i32, i32
  }
  func.func @transform_1(%arg0: i32, %arg1: i32) -> (i32, i32) {
    %c0_i32 = arith.constant 0 : i32
    %c0_i32_0 = arith.constant 0 : i32
    %c0_i32_1 = arith.constant 0 : i32
    return %c0_i32, %c0_i32_0 : i32, i32
  }
  func.func @transform_2(%arg0: i32, %arg1: i32) -> (i32, i32, i32) {
    %c0_i32 = arith.constant 0 : i32
    %c0_i32_0 = arith.constant 0 : i32
    return %arg0, %c0_i32, %arg1 : i32, i32, i32
  }
  func.func @transform_3(%arg0: i32, %arg1: i32) -> (i32, i32, i32) {
    %c0_i32 = arith.constant 0 : i32
    %c0_i32_0 = arith.constant 0 : i32
    %c0_i32_1 = arith.constant 0 : i32
    return %arg0, %c0_i32, %c0_i32_0 : i32, i32, i32
  }
  func.func @transform_4(%arg0: i32, %arg1: i32) -> (i32, i32, i32) {
    %c0_i32 = arith.constant 0 : i32
    %c0_i32_0 = arith.constant 0 : i32
    %c0_i32_1 = arith.constant 0 : i32
    return %arg0, %c0_i32, %c0_i32_0 : i32, i32, i32
  }
}

module attributes {stable_mosaic.version = 11 : i64} {
  func.func @_norm_apply_kernel(%arg0: i32, %arg1: i32, %arg2: memref<1x16x128xbf16, #tpu.memory_space<vmem>>, %arg3: memref<1x16x1xf32, #tpu.memory_space<vmem>>, %arg4: memref<1x16x1xf32, #tpu.memory_space<vmem>>, %arg5: memref<1x16x128xbf16, #tpu.memory_space<vmem>>) attributes {dimension_semantics = [#tpu.dimension_semantics<parallel>, #tpu.dimension_semantics<parallel>], iteration_bounds = array<i64: 2, 2>, scalar_prefetch = 0 : i64, scratch_operands = 0 : i64, tpu.core_type = #tpu.core_type<tc>, window_params = [{transform_indices = @transform_0, window_bounds = array<i64: 1, 16, 128>}, {transform_indices = @transform_1, window_bounds = array<i64: 1, 16, 1>}, {transform_indices = @transform_2, window_bounds = array<i64: 1, 16, 1>}, {transform_indices = @transform_3, window_bounds = array<i64: 1, 16, 128>}]} {
    %c0 = arith.constant 0 : index
    %c0_0 = arith.constant 0 : index
    %c0_1 = arith.constant 0 : index
    %0 = vector.load %arg2[%c0, %c0_0, %c0_1] : memref<1x16x128xbf16, #tpu.memory_space<vmem>>, vector<1x16x128xbf16>
    %1 = vector.shape_cast %0 : vector<1x16x128xbf16> to vector<16x128xbf16>
    %c0_2 = arith.constant 0 : index
    %c0_3 = arith.constant 0 : index
    %c0_4 = arith.constant 0 : index
    %2 = vector.load %arg3[%c0_2, %c0_3, %c0_4] : memref<1x16x1xf32, #tpu.memory_space<vmem>>, vector<1x16x1xf32>
    %3 = vector.shape_cast %2 : vector<1x16x1xf32> to vector<16x1xf32>
    %cst = arith.constant 3.906250e-03 : f32
    %4 = vector.broadcast %cst : f32 to vector<16x1xf32>
    %5 = arith.mulf %3, %4 : vector<16x1xf32>
    %c0_5 = arith.constant 0 : index
    %c0_6 = arith.constant 0 : index
    %c0_7 = arith.constant 0 : index
    %6 = vector.load %arg4[%c0_5, %c0_6, %c0_7] : memref<1x16x1xf32, #tpu.memory_space<vmem>>, vector<1x16x1xf32>
    %7 = vector.shape_cast %6 : vector<1x16x1xf32> to vector<16x1xf32>
    %cst_8 = arith.constant 3.906250e-03 : f32
    %8 = vector.broadcast %cst_8 : f32 to vector<16x1xf32>
    %9 = arith.mulf %7, %8 : vector<16x1xf32>
    %10 = arith.mulf %5, %5 : vector<16x1xf32>
    %11 = arith.subf %9, %10 : vector<16x1xf32>
    %cst_9 = arith.constant 0.000000e+00 : f32
    %12 = vector.broadcast %cst_9 : f32 to vector<16x1xf32>
    %13 = arith.maximumf %11, %12 : vector<16x1xf32>
    %14 = arith.extf %1 : vector<16x128xbf16> to vector<16x128xf32>
    %15 = vector.broadcast %5 : vector<16x1xf32> to vector<16x128xf32>
    %16 = arith.subf %14, %15 : vector<16x128xf32>
    %cst_10 = arith.constant 9.99999974E-6 : f32
    %17 = vector.broadcast %cst_10 : f32 to vector<16x1xf32>
    %18 = arith.addf %13, %17 : vector<16x1xf32>
    %19 = math.rsqrt %18 : vector<16x1xf32>
    %20 = vector.broadcast %19 : vector<16x1xf32> to vector<16x128xf32>
    %21 = arith.mulf %16, %20 : vector<16x128xf32>
    %22 = arith.truncf %21 : vector<16x128xf32> to vector<16x128xbf16>
    %c0_11 = arith.constant 0 : index
    %c0_12 = arith.constant 0 : index
    %c0_13 = arith.constant 0 : index
    %23 = vector.load %arg5[%c0_11, %c0_12, %c0_13] : memref<1x16x128xbf16, #tpu.memory_space<vmem>>, vector<1x16x128xbf16>
    %24 = vector.shape_cast %23 : vector<1x16x128xbf16> to vector<16x128xbf16>
    %25 = vector.shape_cast %22 : vector<16x128xbf16> to vector<1x16x128xbf16>
    tpu.vector_store %arg5[%c0_11, %c0_12, %c0_13], %25 {strides = array<i32>} : memref<1x16x128xbf16, #tpu.memory_space<vmem>>, vector<1x16x128xbf16>,
    return
  }
  func.func @transform_0(%arg0: i32, %arg1: i32) -> (i32, i32, i32) {
    %c0_i32 = arith.constant 0 : i32
    %c0_i32_0 = arith.constant 0 : i32
    return %arg0, %c0_i32, %arg1 : i32, i32, i32
  }
  func.func @transform_1(%arg0: i32, %arg1: i32) -> (i32, i32, i32) {
    %c0_i32 = arith.constant 0 : i32
    %c0_i32_0 = arith.constant 0 : i32
    %c0_i32_1 = arith.constant 0 : i32
    return %arg0, %c0_i32, %c0_i32_0 : i32, i32, i32
  }
  func.func @transform_2(%arg0: i32, %arg1: i32) -> (i32, i32, i32) {
    %c0_i32 = arith.constant 0 : i32
    %c0_i32_0 = arith.constant 0 : i32
    %c0_i32_1 = arith.constant 0 : i32
    return %arg0, %c0_i32, %c0_i32_0 : i32, i32, i32
  }
  func.func @transform_3(%arg0: i32, %arg1: i32) -> (i32, i32, i32) {
    %c0_i32 = arith.constant 0 : i32
    %c0_i32_0 = arith.constant 0 : i32
    return %arg0, %c0_i32, %arg1 : i32, i32, i32
  }
}

module attributes {stable_mosaic.version = 11 : i64} {
  func.func @_conv_instnorm_fused_kernel(%arg0: i32, %arg1: memref<1x256x64xbf16, #tpu.memory_space<vmem>>, %arg2: memref<32x256xbf16, #tpu.memory_space<vmem>>, %arg3: memref<1x32x64xbf16, #tpu.memory_space<vmem>>) attributes {dimension_semantics = [#tpu.dimension_semantics<parallel>], iteration_bounds = array<i64: 2>, scalar_prefetch = 0 : i64, scratch_operands = 0 : i64, tpu.core_type = #tpu.core_type<tc>, window_params = [{transform_indices = @transform_0, window_bounds = array<i64: 1, 256, 64>}, {pipeline_mode = #tpu.pipeline_mode<synchronous>, transform_indices = @transform_1, window_bounds = array<i64: 32, 256>}, {transform_indices = @transform_2, window_bounds = array<i64: 1, 32, 64>}]} {
    %c0 = arith.constant 0 : index
    %c0_0 = arith.constant 0 : index
    %0 = vector.load %arg2[%c0, %c0_0] : memref<32x256xbf16, #tpu.memory_space<vmem>>, vector<32x256xbf16>
    %c0_1 = arith.constant 0 : index
    %c0_2 = arith.constant 0 : index
    %c0_3 = arith.constant 0 : index
    %1 = vector.load %arg1[%c0_1, %c0_2, %c0_3] : memref<1x256x64xbf16, #tpu.memory_space<vmem>>, vector<1x256x64xbf16>
    %2 = vector.shape_cast %1 : vector<1x256x64xbf16> to vector<256x64xbf16>
    %cst = arith.constant dense<0.000000e+00> : vector<32x64xf32>
    %3 = tpu.matmul %0, %2, %cst {dimension_numbers = #tpu.dot_dimension_numbers<[1], [0], [0], [1], [0, 0, 1, 1], [], []>} : vector<32x256xbf16>, vector<256x64xbf16>, vector<32x64xf32> -> vector<32x64xf32>
    %cst_4 = arith.constant dense<0.000000e+00> : vector<32xf32>
    %4 = vector.multi_reduction <add>, %3, %cst_4 [1] : vector<32x64xf32> to vector<32xf32>
    %5 = vector.shape_cast %4 : vector<32xf32> to vector<32x1xf32>
    %cst_5 = arith.constant 1.562500e-02 : f32
    %6 = vector.broadcast %cst_5 : f32 to vector<32x1xf32>
    %7 = arith.mulf %5, %6 : vector<32x1xf32>
    %8 = arith.mulf %3, %3 : vector<32x64xf32>
    %cst_6 = arith.constant dense<0.000000e+00> : vector<32xf32>
    %9 = vector.multi_reduction <add>, %8, %cst_6 [1] : vector<32x64xf32> to vector<32xf32>
    %10 = vector.shape_cast %9 : vector<32xf32> to vector<32x1xf32>
    %cst_7 = arith.constant 1.562500e-02 : f32
    %11 = vector.broadcast %cst_7 : f32 to vector<32x1xf32>
    %12 = arith.mulf %10, %11 : vector<32x1xf32>
    %13 = arith.mulf %7, %7 : vector<32x1xf32>
    %14 = arith.subf %12, %13 : vector<32x1xf32>
    %cst_8 = arith.constant 0.000000e+00 : f32
    %15 = vector.broadcast %cst_8 : f32 to vector<32x1xf32>
    %16 = arith.maximumf %14, %15 : vector<32x1xf32>
    %17 = vector.broadcast %7 : vector<32x1xf32> to vector<32x64xf32>
    %18 = arith.subf %3, %17 : vector<32x64xf32>
    %cst_9 = arith.constant 9.99999974E-6 : f32
    %19 = vector.broadcast %cst_9 : f32 to vector<32x1xf32>
    %20 = arith.addf %16, %19 : vector<32x1xf32>
    %21 = math.rsqrt %20 : vector<32x1xf32>
    %22 = vector.broadcast %21 : vector<32x1xf32> to vector<32x64xf32>
    %23 = arith.mulf %18, %22 : vector<32x64xf32>
    %24 = arith.truncf %23 : vector<32x64xf32> to vector<32x64xbf16>
    %c0_10 = arith.constant 0 : index
    %c0_11 = arith.constant 0 : index
    %c0_12 = arith.constant 0 : index
    %25 = vector.load %arg3[%c0_10, %c0_11, %c0_12] : memref<1x32x64xbf16, #tpu.memory_space<vmem>>, vector<1x32x64xbf16>
    %26 = vector.shape_cast %25 : vector<1x32x64xbf16> to vector<32x64xbf16>
    %27 = vector.shape_cast %24 : vector<32x64xbf16> to vector<1x32x64xbf16>
    tpu.vector_store %arg3[%c0_10, %c0_11, %c0_12], %27 {strides = array<i32>} : memref<1x32x64xbf16, #tpu.memory_space<vmem>>, vector<1x32x64xbf16>,
    return
  }
  func.func @transform_0(%arg0: i32) -> (i32, i32, i32) {
    %c0_i32 = arith.constant 0 : i32
    %c0_i32_0 = arith.constant 0 : i32
    %c0_i32_1 = arith.constant 0 : i32
    return %arg0, %c0_i32, %c0_i32_0 : i32, i32, i32
  }
  func.func @transform_1(%arg0: i32) -> (i32, i32) {
    %c0_i32 = arith.constant 0 : i32
    %c0_i32_0 = arith.constant 0 : i32
    %c0_i32_1 = arith.constant 0 : i32
    return %c0_i32, %c0_i32_0 : i32, i32
  }
  func.func @transform_2(%arg0: i32) -> (i32, i32, i32) {
    %c0_i32 = arith.constant 0 : i32
    %c0_i32_0 = arith.constant 0 : i32
    %c0_i32_1 = arith.constant 0 : i32
    return %arg0, %c0_i32, %c0_i32_0 : i32, i32, i32
  }
}

module attributes {stable_mosaic.version = 11 : i64} {
  func.func @_conv_instnorm_fused_kernel(%arg0: i32, %arg1: memref<1x512x16xbf16, #tpu.memory_space<vmem>>, %arg2: memref<64x512xbf16, #tpu.memory_space<vmem>>, %arg3: memref<1x64x16xbf16, #tpu.memory_space<vmem>>) attributes {dimension_semantics = [#tpu.dimension_semantics<parallel>], iteration_bounds = array<i64: 2>, scalar_prefetch = 0 : i64, scratch_operands = 0 : i64, tpu.core_type = #tpu.core_type<tc>, window_params = [{transform_indices = @transform_0, window_bounds = array<i64: 1, 512, 16>}, {pipeline_mode = #tpu.pipeline_mode<synchronous>, transform_indices = @transform_1, window_bounds = array<i64: 64, 512>}, {transform_indices = @transform_2, window_bounds = array<i64: 1, 64, 16>}]} {
    %c0 = arith.constant 0 : index
    %c0_0 = arith.constant 0 : index
    %0 = vector.load %arg2[%c0, %c0_0] : memref<64x512xbf16, #tpu.memory_space<vmem>>, vector<64x512xbf16>
    %c0_1 = arith.constant 0 : index
    %c0_2 = arith.constant 0 : index
    %c0_3 = arith.constant 0 : index
    %1 = vector.load %arg1[%c0_1, %c0_2, %c0_3] : memref<1x512x16xbf16, #tpu.memory_space<vmem>>, vector<1x512x16xbf16>
    %2 = vector.shape_cast %1 : vector<1x512x16xbf16> to vector<512x16xbf16>
    %cst = arith.constant dense<0.000000e+00> : vector<64x16xf32>
    %3 = tpu.matmul %0, %2, %cst {dimension_numbers = #tpu.dot_dimension_numbers<[1], [0], [0], [1], [0, 0, 1, 1], [], []>} : vector<64x512xbf16>, vector<512x16xbf16>, vector<64x16xf32> -> vector<64x16xf32>
    %cst_4 = arith.constant dense<0.000000e+00> : vector<64xf32>
    %4 = vector.multi_reduction <add>, %3, %cst_4 [1] : vector<64x16xf32> to vector<64xf32>
    %5 = vector.shape_cast %4 : vector<64xf32> to vector<64x1xf32>
    %cst_5 = arith.constant 6.250000e-02 : f32
    %6 = vector.broadcast %cst_5 : f32 to vector<64x1xf32>
    %7 = arith.mulf %5, %6 : vector<64x1xf32>
    %8 = arith.mulf %3, %3 : vector<64x16xf32>
    %cst_6 = arith.constant dense<0.000000e+00> : vector<64xf32>
    %9 = vector.multi_reduction <add>, %8, %cst_6 [1] : vector<64x16xf32> to vector<64xf32>
    %10 = vector.shape_cast %9 : vector<64xf32> to vector<64x1xf32>
    %cst_7 = arith.constant 6.250000e-02 : f32
    %11 = vector.broadcast %cst_7 : f32 to vector<64x1xf32>
    %12 = arith.mulf %10, %11 : vector<64x1xf32>
    %13 = arith.mulf %7, %7 : vector<64x1xf32>
    %14 = arith.subf %12, %13 : vector<64x1xf32>
    %cst_8 = arith.constant 0.000000e+00 : f32
    %15 = vector.broadcast %cst_8 : f32 to vector<64x1xf32>
    %16 = arith.maximumf %14, %15 : vector<64x1xf32>
    %17 = vector.broadcast %7 : vector<64x1xf32> to vector<64x16xf32>
    %18 = arith.subf %3, %17 : vector<64x16xf32>
    %cst_9 = arith.constant 9.99999974E-6 : f32
    %19 = vector.broadcast %cst_9 : f32 to vector<64x1xf32>
    %20 = arith.addf %16, %19 : vector<64x1xf32>
    %21 = math.rsqrt %20 : vector<64x1xf32>
    %22 = vector.broadcast %21 : vector<64x1xf32> to vector<64x16xf32>
    %23 = arith.mulf %18, %22 : vector<64x16xf32>
    %24 = arith.truncf %23 : vector<64x16xf32> to vector<64x16xbf16>
    %c0_10 = arith.constant 0 : index
    %c0_11 = arith.constant 0 : index
    %c0_12 = arith.constant 0 : index
    %25 = vector.load %arg3[%c0_10, %c0_11, %c0_12] : memref<1x64x16xbf16, #tpu.memory_space<vmem>>, vector<1x64x16xbf16>
    %26 = vector.shape_cast %25 : vector<1x64x16xbf16> to vector<64x16xbf16>
    %27 = vector.shape_cast %24 : vector<64x16xbf16> to vector<1x64x16xbf16>
    tpu.vector_store %arg3[%c0_10, %c0_11, %c0_12], %27 {strides = array<i32>} : memref<1x64x16xbf16, #tpu.memory_space<vmem>>, vector<1x64x16xbf16>,
    return
  }
  func.func @transform_0(%arg0: i32) -> (i32, i32, i32) {
    %c0_i32 = arith.constant 0 : i32
    %c0_i32_0 = arith.constant 0 : i32
    %c0_i32_1 = arith.constant 0 : i32
    return %arg0, %c0_i32, %c0_i32_0 : i32, i32, i32
  }
  func.func @transform_1(%arg0: i32) -> (i32, i32) {
    %c0_i32 = arith.constant 0 : i32
    %c0_i32_0 = arith.constant 0 : i32
    %c0_i32_1 = arith.constant 0 : i32
    return %c0_i32, %c0_i32_0 : i32, i32
  }
  func.func @transform_2(%arg0: i32) -> (i32, i32, i32) {
    %c0_i32 = arith.constant 0 : i32
    %c0_i32_0 = arith.constant 0 : i32
    %c0_i32_1 = arith.constant 0 : i32
    return %arg0, %c0_i32, %c0_i32_0 : i32, i32, i32
  }
}

module attributes {stable_mosaic.version = 11 : i64} {
  func.func @_final_kernel(%arg0: memref<2x1024xbf16, #tpu.memory_space<vmem>>, %arg1: memref<1024x1xbf16, #tpu.memory_space<vmem>>, %arg2: memref<1x1xf32, #tpu.memory_space<vmem>>, %arg3: memref<2x1xf32, #tpu.memory_space<vmem>>) attributes {dimension_semantics = [], scalar_prefetch = 0 : i64, scratch_operands = 0 : i64, tpu.core_type = #tpu.core_type<tc>} {
    %c0 = arith.constant 0 : index
    %c0_0 = arith.constant 0 : index
    %0 = vector.load %arg0[%c0, %c0_0] : memref<2x1024xbf16, #tpu.memory_space<vmem>>, vector<2x1024xbf16>
    %c0_1 = arith.constant 0 : index
    %c0_2 = arith.constant 0 : index
    %1 = vector.load %arg1[%c0_1, %c0_2] : memref<1024x1xbf16, #tpu.memory_space<vmem>>, vector<1024x1xbf16>
    %cst = arith.constant dense<0.000000e+00> : vector<2x1xf32>
    %2 = tpu.matmul %0, %1, %cst {dimension_numbers = #tpu.dot_dimension_numbers<[1], [0], [0], [1], [0, 0, 1, 1], [], []>} : vector<2x1024xbf16>, vector<1024x1xbf16>, vector<2x1xf32> -> vector<2x1xf32>
    %c0_3 = arith.constant 0 : index
    %c0_4 = arith.constant 0 : index
    %3 = vector.load %arg2[%c0_3, %c0_4] : memref<1x1xf32, #tpu.memory_space<vmem>>, vector<1x1xf32>
    %4 = vector.broadcast %3 : vector<1x1xf32> to vector<2x1xf32>
    %5 = arith.addf %2, %4 : vector<2x1xf32>
    %6 = arith.negf %5 : vector<2x1xf32>
    %7 = math.exp %6 : vector<2x1xf32>
    %cst_5 = arith.constant 1.000000e+00 : f32
    %8 = vector.broadcast %cst_5 : f32 to vector<2x1xf32>
    %9 = arith.addf %8, %7 : vector<2x1xf32>
    %10 = arith.divf %8, %9 : vector<2x1xf32>
    %c0_6 = arith.constant 0 : index
    %c0_7 = arith.constant 0 : index
    %11 = vector.load %arg3[%c0_6, %c0_7] : memref<2x1xf32, #tpu.memory_space<vmem>>, vector<2x1xf32>
    tpu.vector_store %arg3[%c0_6, %c0_7], %10 {strides = array<i32>} : memref<2x1xf32, #tpu.memory_space<vmem>>, vector<2x1xf32>,
    return
  }
}

</mosaic_0001>

<bundles_post_ra>
// kernel: _lambda_.6
= control target key start
LH: loop header
LB: loop body
LE: loop exit
PB: predicated region body
PF: predicated region fallthrough
CT: control target
= control target key end

     0   :  { %s595_s12 = smov 0   ;;  %s597_s13 = smov 0   ;;  %s692_s0 = inlined_call_operand.vmem [shape: bf16[2,48,1024], index: 0, kind: input, shape index: {}]   ;;  %s693_s1 = inlined_call_operand.vmem [shape: bf16[8,48], index: 1, kind: input, shape index: {}]   ;;  %s694_s2 = inlined_call_operand.vmem [shape: f32[8,1], index: 2, kind: input, shape index: {}]   ;;  %s695_s3 = inlined_call_operand.vmem [shape: bf16[2,8,1024], index: 3, kind: output, shape index: {}]  }
   0x1   :  { %s599_s14 = smov 0   ;;  %s601_s15 = smov 0  }
   0x2   :  { %s603_s16 = smov 0   ;;  %s605_s17 = smov 0  }
   0x3   :  { %s607_s18 = smov 0  }
   0x4 LB: > { %s22_s19 = sadd.s32 1, %s562_s16  ;;  %s25_s20 = sadd.s32 1, %s566_s17  ;;  %s570_s18 = sphi %s607_s18, %s13_s18   ;;  %s566_s17 = sphi %s605_s17, %s701_s17   ;;  %s562_s16 = sphi %s603_s16, %s700_s16   ;;  %s558_s15 = sphi %s601_s15, %s699_s15   ;;  %s554_s14 = sphi %s599_s14, %s698_s14   ;;  %s550_s13 = sphi %s597_s13, %s697_s13   ;;  %s546_s12 = sphi %s595_s12, %s696_s12  }
   0x5   : > { %p23_p0 = scmp.ge.s32.totalorder %s22_s19, 8  ;;  %p41_p1 = scmp.ne.s32.totalorder %s550_s13, %s546_s12 }
   0x6   : > { %p42_p2 = scmp.eq.s32.totalorder %s570_s18, 0  ;;  %s34_s24 = sadd.s32 1, %s550_s13 }
   0x7   : > { %s703_s19 = smov (%p23_p0, %s22_s19), 0  ;;  %s705_s20 = smov (!%p23_p0, %s25_s20), %s566_s17 }
   0x8   : > { %p43_p3 = por %p42_p2, %p41_p1  ;;  %p27_p4 = scmp.ge.s32.totalorder %s705_s20, 2 }
   0x9   : > { %s30_s21 = ssub.s32 %s562_s16, %s703_s19  ;;  %p425_p6 = scmp.ge.s32.totalorder %s570_s18, 16 }
   0xa   : > { %s707_s20 = smov (%p27_p4, %s705_s20), 0 }
   0xb   : > { %s29_s22 = ssub.s32 %s566_s17, %s707_s20  ;;  %143 = sbr.rel (%p425_p6) target bundleno = 31 (0x1f), region = 24 }
   0xc   : > { %s31_s23 = sor.u32 %s30_s21, %s29_s22 }
   0xd   : > { %p32_p5 = scmp.eq.s32.totalorder %s31_s23, 0 }
   0xf   : > { %s646_s25 = scalar_select %p32_p5, %s550_s13, %s34_s24  }
  0x12   : > { %146 = sbr.rel (!%p43_p3) target bundleno = 31 (0x1f), region = 28  ;;  %s148_s26 = sand.u32 (%p43_p3), 1, %s550_s13  }
  0x13   : > { %s451_s27 = smul.u32 (%p43_p3), 48, %s566_s17 }
  0x14   : > { %s450_s28 = smul.u32 (%p43_p3), 24, %s148_s26 }
  0x15   : > { %s152_s29 = sadd.s32 (%p43_p3), %s562_s16, %s451_s27 }
  0x16   : > { %s426_s30 = sshll.u32 (%p43_p3), %s152_s29, 2  ;;  %s150_s7 = scalar_lea.vmem (%p43_p3), [#allocation2], %s450_s28 }
  0x17   : > { %s154_s6 = scalar_lea.vmem (%p43_p3), %s692_s0, %s426_s30 }
  0x18   : > { %v170_v0 = vld [vmem:[%s154_s6] sm:$0xf] (%p43_p3) }
  0x19   : > { %v172_v1 = vld [vmem:[%s154_s6 + $0x20] sm:$0xf]  ;;  %171 = vst [vmem:[%s150_s7] sm:$0xf] %v170_v0 }
  0x1a   : > { %v174_v2 = vld [vmem:[%s154_s6 + $0x40] sm:$0xf]  ;;  %173 = vst [vmem:[%s150_s7 + $0x4] sm:$0xf] %v172_v1 }
  0x1b   : > { %175 = vst [vmem:[%s150_s7 + $0x8] sm:$0xf] %v174_v2  ;;  %v176_v3 = vld [vmem:[%s154_s6 + $0x60] sm:$0xf] }
  0x1c   : > { %v178_v4 = vld [vmem:[%s154_s6 + $0x80] sm:$0xf]  ;;  %177 = vst [vmem:[%s150_s7 + $0xc] sm:$0xf] %v176_v3 }
  0x1d   : > { %v180_v5 = vld [vmem:[%s154_s6 + $0xa0] sm:$0xf]  ;;  %179 = vst [vmem:[%s150_s7 + $0x10] sm:$0xf] %v178_v4 }
  0x1e   : > { %181 = vst [vmem:[%s150_s7 + $0x14] sm:$0xf] %v180_v5 }
  0x1f PF: > { %p427_p7 = scmp.ge.s32.totalorder %s570_s18, 1  ;;  %p215_p8 = scmp.lt.s32.totalorder %s570_s18, 17 }
  0x21   : > { %p216_p9 = pnand %p427_p7, %p215_p8 }
  0x22   : > { %s222_s8 = sand.u32 (!%p216_p9), 1, %s546_s12   ;;  %v572_v6 = vmov (!%p216_p9), 0.0   ;;  %vm573_vm0 = vmmov (!%p216_p9), 0   ;;  %v264_v7 = vld [vmem:[%s694_s2] sm:$0xff] (!%p216_p9)  ;;  %v574_v8 = vmov (!%p216_p9), 0   ;;  %vm288_vm1 = vcmask (!%p216_p9), 392192  }
  0x23   : > { %219 = sbr.rel (%p216_p9) target bundleno = 268 (0x10c), region = 69  ;;  %440 = vmatprep.subr.bf16.mxu0 (!%p216_p9), %v572_v6  ;;  %446 = vmatprep.mubr.msk.bf16.mxu0 (!%p216_p9), %vm573_vm0, %v572_v6  ;;  %v257_v12 = vld [vmem:[%s693_s1] sm:$0xf] (!%p216_p9)  ;;  %p248_p10 = scmp.lt.s32.totalorder (!%p216_p9), %s558_s15, 1 }
  0x24   : > { %s452_s9 = smul.u32 (!%p216_p9), 24, %s222_s8  ;;  %512 = vset.pattern.permute.xlu0 (!%p216_p9), %v574_v8  ;;  %p250_p11 = scmp.lt.s32.totalorder (!%p216_p9), %s554_s14, 7 }
  0x25   : > { %267 = vperm.xlu0 (!%p216_p9), %512, %v264_v7  }
  0x26   : > { %s224_s21 = scalar_lea.vmem (!%p216_p9), [#allocation2], %s452_s9 }
  0x27   : > { %v513_v9 = vld [vmem:[%s224_s21] sm:$0xff] (!%p216_p9)   ;;  %v514_v10 = vld [vmem:[%s224_s21 + $0x8] sm:$0xff] (!%p216_p9)   ;;  %v515_v11 = vld [vmem:[%s224_s21 + $0x10] sm:$0xff] (!%p216_p9)  }
  0x28   : > { %441 = vmatpush3.bf16.msra.mxu0 (!%p216_p9), %v513_v9 }
  0x29   : > { %442 = vmatprep.subr.bf16.mxu0 (!%p216_p9), %v572_v6 }
  0x2a   : > { %s709_s15 = smov (!%p248_p10, %s558_s15), 1  ;;  %s711_s14 = smov (!%p250_p11, %s554_s14), 7 }
  0x2b   : > { %s428_s23 = sshll.u32 %s709_s15, 3 }
  0x2c   : > { %443 = vmatpush3.bf16.msra.mxu0 %v514_v10  ;;  %s253_s24 = sadd.s32 %s428_s23, %s711_s14 }
  0x2d   : > { %444 = vmatprep.subr.bf16.mxu0 %v572_v6  ;;  %s429_s26 = sshll.u32 %s253_s24, 2 }
  0x2e   : > { %s255_s29 = scalar_lea.vmem %s695_s3, %s429_s26 }
  0x30   : > { %445 = vmatpush3.bf16.msra.mxu0 %v515_v11 }
  0x33   : > { %447 = vmatmul.mubr.msk.bf16.vlgmr.msra.gmra.mrb[0].mxu0 %vm288_vm1, %v257_v12 }
  0xa4   : > { %v268_v13 = vpop.permute.xlu0 %267 }
 0x106   : > { %v326_v14 = vpop.f32.mrb[0].mxu0 }
 0x107   : > { %v327_v15 = vadd.f32 %v326_v14, %v268_v13  ;;  %v448_v16 = vpop.f32.mrb[1].mxu0 }
 0x108   : > { %v329_v17 = vpop.f32.mrb[2].mxu0 }
 0x109   : > { %v332_v18 = vpack.c.bf16 %v327_v15, %v327_v15  ;;  %v449_v19 = vpop.f32.mrb[3].mxu0 }
 0x10b   : > { %333 = vst [vmem:[%s255_s29] sm:$0xf] %v332_v18 }
 0x10c PF: > { %s13_s18 = sadd.s32 1, %s570_s18   ;;  %s696_s12 = smov %s550_s13 }
 0x10d   : > { %p10_p12 = scmp.ge.s32.totalorder %s13_s18, 18   ;;  %s697_s13 = smov %s646_s25 }
 0x10e   : > { %s698_s14 = smov %s562_s16  ;;  %s699_s15 = smov %s566_s17 }
 0x10f   : > { %s700_s16 = smov %s703_s19  ;;  %s701_s17 = smov %s707_s20 }
 0x110   :  { %12 = sbr.rel (!%p10_p12) target bundleno = 4 (0x4), region = 108 }

// kernel: _lambda_.7
= control target key start
LH: loop header
LB: loop body
LE: loop exit
PB: predicated region body
PF: predicated region fallthrough
CT: control target
= control target key end

     0   :  { %s905_s15 = smov 0   ;;  %s907_s16 = smov 0   ;;  %s1062_s0 = inlined_call_operand.vmem [shape: bf16[2,128,256], index: 0, kind: input, shape index: {}]   ;;  %s1063_s1 = inlined_call_operand.vmem [shape: bf16[16,128], index: 1, kind: input, shape index: {}]   ;;  %s1064_s2 = inlined_call_operand.vmem [shape: bf16[2,16,256], index: 2, kind: output, shape index: {0}]   ;;  %s1065_s3 = inlined_call_operand.vmem [shape: f32[2,16,1], index: 3, kind: output, shape index: {1}]   ;;  %s1066_s4 = inlined_call_operand.vmem [shape: f32[2,16,1], index: 4, kind: output, shape index: {2}]  }
   0x1   :  { %s909_s17 = smov 0   ;;  %s911_s18 = smov 0  }
   0x2   :  { %s913_s19 = smov 0   ;;  %s915_s20 = smov 0  }
   0x3   :  { %s917_s21 = smov 0  }
   0x4 LB: > { %s24_s22 = sadd.s32 1, %s867_s19  ;;  %s27_s23 = sadd.s32 1, %s871_s20  ;;  %s875_s21 = sphi %s917_s21, %s15_s21   ;;  %s871_s20 = sphi %s915_s20, %s1073_s20   ;;  %s867_s19 = sphi %s913_s19, %s1072_s19   ;;  %s863_s18 = sphi %s911_s18, %s1071_s18   ;;  %s859_s17 = sphi %s909_s17, %s1070_s17   ;;  %s855_s16 = sphi %s907_s16, %s1069_s16   ;;  %s851_s15 = sphi %s905_s15, %s1068_s15  }
   0x5   : > { %p25_p0 = scmp.ge.s32.totalorder %s24_s22, 2  ;;  %s684_s24 = sadd.s32 4294967295, %s875_s21  }
   0x6   : > { %p43_p1 = scmp.ne.s32.totalorder %s855_s16, %s851_s15  ;;  %p44_p2 = scmp.eq.s32.totalorder %s875_s21, 0 }
   0x7   : > { %s1075_s22 = smov (%p25_p0, %s24_s22), 0  ;;  %s1077_s23 = smov (!%p25_p0, %s27_s23), %s871_s20 }
   0x8   : > { %p29_p3 = scmp.ge.s32.totalorder %s1077_s23, 2  ;;  %p96_p4 = scmp.eq.s32.totalorder %s684_s24, 3 }
   0x9   : > { %s32_s25 = ssub.s32 %s867_s19, %s1075_s22  ;;  %p45_p5 = por %p44_p2, %p43_p1 }
   0xa   : > { %s1079_s23 = smov (%p29_p3, %s1077_s23), 0  ;;  %p953_p6 = por %p96_p4, %p43_p1 }
   0xb   : > { %s31_s27 = ssub.s32 %s871_s20, %s1079_s23  ;;  %s36_s29 = sadd.s32 1, %s855_s16 }
   0xc   : > { %s33_s28 = sor.u32 %s32_s25, %s31_s27  ;;  %p687_p8 = scmp.ge.s32.totalorder %s875_s21, 4 }
   0xd   : > { %p34_p7 = scmp.eq.s32.totalorder %s33_s28, 0 }
   0xe   : > { %173 = sbr.rel (%p687_p8) target bundleno = 37 (0x25), region = 20 }
   0xf   : > { %s961_s30 = scalar_select %p34_p7, %s855_s16, %s36_s29  }
  0x15   : > { %176 = sbr.rel (!%p45_p5) target bundleno = 37 (0x25), region = 24  ;;  %s178_s5 = sand.u32 (%p45_p5), 1, %s855_s16  }
  0x16   : > { %s689_s6 = sshll.u32 (%p45_p5), %s871_s20, 5  ;;  %s688_s7 = sshll.u32 (%p45_p5), %s178_s5, 6 }
  0x17   : > { %s182_s8 = sadd.s32 (%p45_p5), %s867_s19, %s689_s6  ;;  %s180_s13 = scalar_lea.vmem (%p45_p5), [#allocation2], %s688_s7 }
  0x18   : > { %s690_s9 = sshll.u32 (%p45_p5), %s182_s8, 2 }
  0x19   : > { %s970_s12 = scalar_lea.vmem (%p45_p5), %s1062_s0, %s690_s9 }
  0x1a   : > { %v200_v0 = vld [vmem:[%s970_s12] sm:$0xf] (%p45_p5)  ;;  %v202_v1 = vld [vmem:[%s970_s12 + $0x8] sm:$0xf] (%p45_p5)  ;;  %v204_v2 = vld [vmem:[%s970_s12 + $0x10] sm:$0xf] (%p45_p5) }
  0x1b   : > { %201 = vst [vmem:[%s180_s13] sm:$0xf] (%p45_p5), %v200_v0  ;;  %203 = vst [vmem:[%s180_s13 + $0x4] sm:$0xf] (%p45_p5), %v202_v1  ;;  %v206_v3 = vld [vmem:[%s970_s12 + $0x18] sm:$0xf] (%p45_p5) }
  0x1c   : > { %205 = vst [vmem:[%s180_s13 + $0x8] sm:$0xf] %v204_v2  ;;  %v208_v4 = vld [vmem:[%s970_s12 + $0x20] sm:$0xf]  ;;  %v210_v5 = vld [vmem:[%s970_s12 + $0x28] sm:$0xf] }
  0x1d   : > { %207 = vst [vmem:[%s180_s13 + $0xc] sm:$0xf] %v206_v3  ;;  %209 = vst [vmem:[%s180_s13 + $0x10] sm:$0xf] %v208_v4  ;;  %v212_v6 = vld [vmem:[%s970_s12 + $0x30] sm:$0xf] }
  0x1e   : > { %211 = vst [vmem:[%s180_s13 + $0x14] sm:$0xf] %v210_v5  ;;  %v214_v7 = vld [vmem:[%s970_s12 + $0x38] sm:$0xf]  ;;  %v216_v8 = vld [vmem:[%s970_s12 + $0x40] sm:$0xf] }
  0x1f   : > { %213 = vst [vmem:[%s180_s13 + $0x18] sm:$0xf] %v212_v6  ;;  %215 = vst [vmem:[%s180_s13 + $0x1c] sm:$0xf] %v214_v7  ;;  %v218_v9 = vld [vmem:[%s970_s12 + $0x48] sm:$0xf] }
  0x20   : > { %217 = vst [vmem:[%s180_s13 + $0x20] sm:$0xf] %v216_v8  ;;  %v220_v10 = vld [vmem:[%s970_s12 + $0x50] sm:$0xf]  ;;  %v222_v11 = vld [vmem:[%s970_s12 + $0x58] sm:$0xf] }
  0x21   : > { %219 = vst [vmem:[%s180_s13 + $0x24] sm:$0xf] %v218_v9  ;;  %221 = vst [vmem:[%s180_s13 + $0x28] sm:$0xf] %v220_v10  ;;  %v224_v12 = vld [vmem:[%s970_s12 + $0x60] sm:$0xf] }
  0x22   : > { %223 = vst [vmem:[%s180_s13 + $0x2c] sm:$0xf] %v222_v11  ;;  %v226_v13 = vld [vmem:[%s970_s12 + $0x68] sm:$0xf]  ;;  %v228_v14 = vld [vmem:[%s970_s12 + $0x70] sm:$0xf] }
  0x23   : > { %225 = vst [vmem:[%s180_s13 + $0x30] sm:$0xf] %v224_v12  ;;  %227 = vst [vmem:[%s180_s13 + $0x34] sm:$0xf] %v226_v13  ;;  %v230_v15 = vld [vmem:[%s970_s12 + $0x78] sm:$0xf] }
  0x24   : > { %229 = vst [vmem:[%s180_s13 + $0x38] sm:$0xf] %v228_v14  ;;  %231 = vst [vmem:[%s180_s13 + $0x3c] sm:$0xf] %v230_v15 }
  0x25 PF: > { %p691_p9 = scmp.ge.s32.totalorder %s875_s21, 1  ;;  %p285_p10 = scmp.lt.s32.totalorder %s875_s21, 5 }
  0x27   : > { %p286_p11 = pnand %p691_p9, %p285_p10 }
  0x28   : > { %s292_s14 = sand.u32 (!%p286_p11), 1, %s851_s15   ;;  %p326_p12 = scmp.lt.s32.totalorder (!%p286_p11), %s863_s18, 1 }
  0x29   : > { %289 = sbr.rel (%p286_p11) target bundleno = 452 (0x1c4), region = 65  ;;  %s692_s24 = sshll.u32 (!%p286_p11), %s292_s14, 6 }
  0x2a   : > { %s693_s25 = sshll.u32 (!%p286_p11), %s292_s14, 3  ;;  %s1003_s10 = scalar_lea.vmem (!%p286_p11), [#allocation2], %s692_s24 }
  0x2b   : > { %s1005_s11 = scalar_lea.vmem (!%p286_p11), [#allocation3], %s693_s25  ;;  %p698_p13 = scmp.ne.s32.totalorder (!%p286_p11), %s859_s17, 0 }
  0x30   : > { %s327_s27 = scalar_select %p326_p12, %s863_s18, 1 }
  0x31   : > { %340 = sbr.rel (%p698_p13) target bundleno = 56 (0x38), region = 73  ;;  %vm341_vm0 = vcmask (!%p698_p13), 7168   ;;  %v877_v16 = vmov (!%p698_p13), 0.0  }
  0x32   : > { %s715_s28 = sshll.u32 %s327_s27, 4 }
  0x33   : > { %s996_s6 = scalar_lea.vmem %s1065_s3, %s715_s28  ;;  %s1001_s9 = scalar_lea.vmem %s1066_s4, %s715_s28 }
  0x34   : > { %342 = vst.msk [vmem:[%s996_s6] sm:$0xff] (!%p698_p13), %vm341_vm0, %v877_v16  ;;  %343 = vst.msk [vmem:[%s996_s6 + $0x8] sm:$0xff] (!%p698_p13), %vm341_vm0, %v877_v16 }
  0x35   : > { %344 = vst.msk [vmem:[%s1001_s9] sm:$0xff] (!%p698_p13), %vm341_vm0, %v877_v16  ;;  %345 = vst.msk [vmem:[%s1001_s9 + $0x8] sm:$0xff] (!%p698_p13), %vm341_vm0, %v877_v16 }
  0x38 PF: > { %v812_v17 = vld [vmem:[%s1003_s10] sm:$0xff]   ;;  %v878_v18 = vmov 0.0   ;;  %v813_v19 = vld [vmem:[%s1003_s10 + $0x8] sm:$0xff]   ;;  %vm879_vm1 = vmmov 0   ;;  %v814_v20 = vld [vmem:[%s1003_s10 + $0x10] sm:$0xff]   ;;  %vm477_vm2 = vcmask 7168  }
  0x39   : > { %733 = vmatprep.subr.bf16.mxu0 %v878_v18  ;;  %749 = vmatprep.mubr.msk.bf16.mxu0 %vm879_vm1, %v878_v18  ;;  %v815_v21 = vld [vmem:[%s1003_s10 + $0x18] sm:$0xff]   ;;  %v816_v22 = vld [vmem:[%s1003_s10 + $0x20] sm:$0xff]   ;;  %v817_v23 = vld [vmem:[%s1003_s10 + $0x28] sm:$0xff]   ;;  %s711_s13 = sshll.u32 (%p953_p6), %s863_s18, 2 }
  0x3a   : > { %734 = vmatpush3.bf16.msra.mxu0 %v812_v17  ;;  %v818_v24 = vld [vmem:[%s1003_s10 + $0x30] sm:$0xff]   ;;  %v819_v25 = vld [vmem:[%s1003_s10 + $0x38] sm:$0xff]   ;;  %v820_v26 = vld [vmem:[%s1063_s1] sm:$0xff]   ;;  %s510_s14 = sadd.s32 (%p953_p6), %s859_s17, %s711_s13 }
  0x3b   : > { %735 = vmatprep.subr.bf16.mxu0 %v878_v18  ;;  %v469_v34 = vld [vmem:[%s996_s6] sm:$0xff]  ;;  %v470_v39 = vld [vmem:[%s996_s6 + $0x8] sm:$0xff]  ;;  %s712_s24 = sshll.u32 (%p953_p6), %s510_s14, 2 }
  0x3c   : > { %v480_v36 = vld [vmem:[%s1001_s9] sm:$0xff]  ;;  %v481_v42 = vld [vmem:[%s1001_s9 + $0x8] sm:$0xff]  ;;  %s512_s28 = scalar_lea.vmem (%p953_p6), %s1064_s2, %s712_s24 }
  0x3e   : > { %736 = vmatpush3.bf16.msra.mxu0 %v813_v19 }
  0x3f   : > { %737 = vmatprep.subr.bf16.mxu0 %v878_v18 }
  0x42   : > { %738 = vmatpush3.bf16.msra.mxu0 %v814_v20 }
  0x43   : > { %739 = vmatprep.subr.bf16.mxu0 %v878_v18 }
  0x46   : > { %740 = vmatpush3.bf16.msra.mxu0 %v815_v21 }
  0x47   : > { %741 = vmatprep.subr.bf16.mxu0 %v878_v18 }
  0x4a   : > { %742 = vmatpush3.bf16.msra.mxu0 %v816_v22 }
  0x4b   : > { %743 = vmatprep.subr.bf16.mxu0 %v878_v18 }
  0x4e   : > { %744 = vmatpush3.bf16.msra.mxu0 %v817_v23 }
  0x4f   : > { %745 = vmatprep.subr.bf16.mxu0 %v878_v18 }
  0x52   : > { %746 = vmatpush3.bf16.msra.mxu0 %v818_v24 }
  0x53   : > { %747 = vmatprep.subr.bf16.mxu0 %v878_v18 }
  0x56   : > { %748 = vmatpush3.bf16.msra.mxu0 %v819_v25 }
  0x59   : > { %750 = vmatmul.mubr.bf16.vlgmr.msra.gmra.mrb[0].mxu0 %v820_v26 }
 0x12c   : > { %v452_v27 = vpop.f32.mrb[0].mxu0 }
 0x12d   : > { %471 = vadd.xlane.f32.xlu0 %v452_v27  ;;  %v751_v28 = vpop.f32.mrb[1].mxu0  ;;  %v482_v29 = vmul.f32 %v452_v27, %v452_v27 }
 0x12e   : > { %v455_v30 = vpop.f32.mrb[2].mxu0 }
 0x12f   : > { %v722_v31 = vpack.c.bf16 %v455_v30, %v452_v27  ;;  %484 = vadd.xlane.f32.xlu1 %v482_v29  ;;  %v752_v32 = vpop.f32.mrb[3].mxu0  ;;  %v483_v33 = vmul.f32 %v455_v30, %v455_v30 }
 0x131   : > { %723 = vst [vmem:[%s1005_s11] sm:$0xff] %v722_v31   ;;  %473 = vadd.xlane.f32.xlu0 %v455_v30 }
 0x133   : > { %486 = vadd.xlane.f32.xlu1 %v483_v33 }
 0x138   : > { %v528_v46 = vld [vmem:[%s1005_s11] sm:$0xf] (%p953_p6)  ;;  %v530_v47 = vld [vmem:[%s1005_s11 + $0x4] sm:$0xf] (%p953_p6) }
 0x139   : > { %529 = vst [vmem:[%s512_s28] sm:$0xf] (%p953_p6), %v528_v46  ;;  %531 = vst [vmem:[%s512_s28 + $0x8] sm:$0xf] (%p953_p6), %v530_v47 }
 0x1ba   : > { %v472_v35 = vpop.xlane.xlu0 %471 }
 0x1bb   : > { %v475_v37 = vadd.f32 %v472_v35, %v469_v34 }
 0x1bc   : > { %v485_v38 = vpop.xlane.xlu1 %484 }
 0x1bd   : > { %478 = vst.msk [vmem:[%s996_s6] sm:$0xff] %vm477_vm2, %v475_v37  ;;  %v488_v40 = vadd.f32 %v485_v38, %v480_v36  ;;  %508 = sbr.rel (!%p953_p6) target bundleno = 452 (0x1c4), region = 77 }
 0x1be   : > { %v474_v41 = vpop.xlane.xlu0 %473 }
 0x1bf   : > { %490 = vst.msk [vmem:[%s1001_s9] sm:$0xff] %vm477_vm2, %v488_v40  ;;  %v476_v43 = vadd.f32 %v474_v41, %v470_v39 }
 0x1c0   : > { %v487_v44 = vpop.xlane.xlu1 %486 }
 0x1c1   : > { %479 = vst.msk [vmem:[%s996_s6 + $0x8] sm:$0xff] %vm477_vm2, %v476_v43  ;;  %v489_v45 = vadd.f32 %v487_v44, %v481_v42 }
 0x1c3   : > { %491 = vst.msk [vmem:[%s1001_s9 + $0x8] sm:$0xff] %vm477_vm2, %v489_v45 }
 0x1c4 PF: > { %s15_s21 = sadd.s32 1, %s875_s21   ;;  %s1068_s15 = smov %s855_s16 }
 0x1c5   : > { %p12_p0 = scmp.ge.s32.totalorder %s15_s21, 6   ;;  %s1069_s16 = smov %s961_s30 }
 0x1c6   : > { %s1070_s17 = smov %s867_s19  ;;  %s1071_s18 = smov %s871_s20 }
 0x1c7   : > { %s1072_s19 = smov %s1075_s22  ;;  %s1073_s20 = smov %s1079_s23 }
 0x1c8   :  { %14 = sbr.rel (!%p12_p0) target bundleno = 4 (0x4), region = 173 }

// kernel: _lambda_.8
= control target key start
LH: loop header
LB: loop body
LE: loop exit
PB: predicated region body
PF: predicated region fallthrough
CT: control target
= control target key end

     0   :  { %s648_s12 = smov 0   ;;  %s650_s13 = smov 0   ;;  %s752_s0 = inlined_call_operand.vmem [shape: bf16[2,16,256], index: 0, kind: input, shape index: {}]   ;;  %s753_s1 = inlined_call_operand.vmem [shape: f32[2,16,1], index: 1, kind: input, shape index: {}]   ;;  %s754_s2 = inlined_call_operand.vmem [shape: f32[2,16,1], index: 2, kind: input, shape index: {}]   ;;  %s755_s3 = inlined_call_operand.vmem [shape: bf16[2,16,256], index: 3, kind: output, shape index: {}]  }
   0x1   :  { %s652_s14 = smov 0   ;;  %s654_s15 = smov 0  }
   0x2   :  { %s656_s16 = smov 0   ;;  %s658_s17 = smov 0  }
   0x3   :  { %s660_s18 = smov 0  }
   0x4 LB: > { %s22_s19 = sadd.s32 1, %s617_s16  ;;  %s25_s20 = sadd.s32 1, %s621_s17  ;;  %s625_s18 = sphi %s660_s18, %s13_s18   ;;  %s621_s17 = sphi %s658_s17, %s762_s17   ;;  %s617_s16 = sphi %s656_s16, %s761_s16   ;;  %s613_s15 = sphi %s654_s15, %s760_s15   ;;  %s609_s14 = sphi %s652_s14, %s759_s14   ;;  %s605_s13 = sphi %s650_s13, %s758_s13   ;;  %s601_s12 = sphi %s648_s12, %s757_s12  }
   0x5   : > { %p23_p0 = scmp.ge.s32.totalorder %s22_s19, 2  ;;  %s474_s21 = sadd.s32 4294967295, %s625_s18  }
   0x6   : > { %p41_p1 = scmp.ne.s32.totalorder %s605_s13, %s601_s12  ;;  %p42_p2 = scmp.eq.s32.totalorder %s625_s18, 0 }
   0x7   : > { %s764_s19 = smov (%p23_p0, %s22_s19), 0  ;;  %s766_s20 = smov (!%p23_p0, %s25_s20), %s621_s17 }
   0x8   : > { %p27_p3 = scmp.ge.s32.totalorder %s766_s20, 2  ;;  %p125_p4 = scmp.eq.s32.totalorder %s474_s21, 3 }
   0x9   : > { %s30_s22 = ssub.s32 %s617_s16, %s764_s19  ;;  %p43_p5 = por %p42_p2, %p41_p1 }
   0xa   : > { %s768_s20 = smov (%p27_p3, %s766_s20), 0  ;;  %p696_p6 = por %p125_p4, %p41_p1 }
   0xb   : > { %s29_s24 = ssub.s32 %s621_s17, %s768_s20  ;;  %s34_s26 = sadd.s32 1, %s605_s13 }
   0xc   : > { %s31_s25 = sor.u32 %s30_s22, %s29_s24  ;;  %p477_p8 = scmp.ge.s32.totalorder %s625_s18, 4 }
   0xd   : > { %p32_p7 = scmp.eq.s32.totalorder %s31_s25, 0 }
   0xe   : > { %147 = sbr.rel (%p477_p8) target bundleno = 28 (0x1c), region = 16 }
   0xf   : > { %s704_s27 = scalar_select %p32_p7, %s605_s13, %s34_s26  }
  0x15   : > { %150 = sbr.rel (!%p43_p5) target bundleno = 28 (0x1c), region = 20  ;;  %s152_s28 = sand.u32 (%p43_p5), 1, %s605_s13  }
  0x16   : > { %s479_s29 = sshll.u32 (%p43_p5), %s621_s17, 2  ;;  %s478_s30 = sshll.u32 (%p43_p5), %s152_s28, 3 }
  0x17   : > { %s156_s4 = sadd.s32 (%p43_p5), %s617_s16, %s479_s29  ;;  %s154_s9 = scalar_lea.vmem (%p43_p5), [#allocation2], %s478_s30 }
  0x18   : > { %s480_s5 = sshll.u32 (%p43_p5), %s156_s4, 2 }
  0x19   : > { %s158_s8 = scalar_lea.vmem (%p43_p5), %s752_s0, %s480_s5 }
  0x1a   : > { %v174_v0 = vld [vmem:[%s158_s8] sm:$0xf] (%p43_p5)  ;;  %v176_v1 = vld [vmem:[%s158_s8 + $0x8] sm:$0xf] (%p43_p5) }
  0x1b   : > { %175 = vst [vmem:[%s154_s9] sm:$0xf] (%p43_p5), %v174_v0  ;;  %177 = vst [vmem:[%s154_s9 + $0x4] sm:$0xf] (%p43_p5), %v176_v1 }
  0x1c PF: > { %p481_p9 = scmp.ge.s32.totalorder %s625_s18, 1  ;;  %p219_p10 = scmp.lt.s32.totalorder %s625_s18, 5 }
  0x1e   : > { %p220_p11 = pnand %p481_p9, %p219_p10 }
  0x1f   : > { %p258_p12 = scmp.lt.s32.totalorder (!%p220_p11), %s613_s15, 1  ;;  %v627_v2 = vmov (!%p220_p11), 0   ;;  %s226_s29 = sand.u32 (!%p220_p11), 1, %s601_s12  }
  0x20   : > { %223 = sbr.rel (%p220_p11) target bundleno = 210 (0xd2), region = 69  ;;  %565 = vset.pattern.permute.xlu0 (!%p220_p11), %v627_v2  ;;  %566 = vset.pattern.permute.xlu1 (!%p220_p11), %v627_v2  ;;  %s482_s30 = sshll.u32 (!%p220_p11), %s226_s29, 3 }
  0x21   : > { %s228_s4 = scalar_lea.vmem (!%p220_p11), [#allocation2], %s482_s30  ;;  %s257_s5 = scalar_lea.vmem (!%p220_p11), [#allocation3], %s482_s30 }
  0x22   : > { %v500_v22 = vld [vmem:[%s228_s4] sm:$0xff] (!%p220_p11)  }
  0x23   : > { %v501_v23 = vunpack.c.l.bf16 (!%p220_p11), %v500_v22  ;;  %v502_v24 = vunpack.c.h.bf16 (!%p220_p11), %v500_v22 }
  0x27   : > { %s259_s10 = scalar_select %p258_p12, %s613_s15, 1 }
  0x28   : > { %s491_s12 = sshll.u32 (%p696_p6), %s613_s15, 2 }
  0x29   : > { %s495_s11 = sshll.u32 %s259_s10, 4  ;;  %s332_s6 = sadd.s32 (%p696_p6), %s609_s14, %s491_s12 }
  0x2a   : > { %s262_s24 = scalar_lea.vmem %s753_s1, %s495_s11  ;;  %s267_s28 = scalar_lea.vmem %s754_s2, %s495_s11 }
  0x2b   : > { %v270_v3 = vld [vmem:[%s262_s24] sm:$0xff]  ;;  %v271_v4 = vld [vmem:[%s262_s24 + $0x8] sm:$0xff]  ;;  %s492_s7 = sshll.u32 (%p696_p6), %s332_s6, 2 }
  0x2c   : > { %v274_v5 = vld [vmem:[%s267_s28] sm:$0xff]  ;;  %v272_v6 = vmul.f32 0.00390625, %v270_v3  ;;  %v275_v7 = vld [vmem:[%s267_s28 + $0x8] sm:$0xff]  ;;  %v273_v9 = vmul.f32 0.00390625, %v271_v4  ;;  %s334_s10 = scalar_lea.vmem (%p696_p6), %s755_s3, %s492_s7 }
  0x2d   : > { %v276_v8 = vmul.f32 0.00390625, %v274_v5  ;;  %v277_v10 = vmul.f32 0.00390625, %v275_v7 }
  0x2e   : > { %288 = vperm.xlu0 %565, %v272_v6   ;;  %v278_v11 = vmul.f32 %v272_v6, %v272_v6  ;;  %v279_v12 = vmul.f32 %v273_v9, %v273_v9 }
  0x30   : > { %v280_v13 = vsub.f32 %v276_v8, %v278_v11  ;;  %v281_v14 = vsub.f32 %v277_v10, %v279_v12 }
  0x32   : > { %v282_v15 = vmax.f32 %v280_v13, 0.0  ;;  %v283_v16 = vmax.f32 %v281_v14, 0.0  ;;  %293 = vperm.xlu0 %565, %v273_v9  }
  0x34   : > { %v298_v17 = vadd.f32 1e-05, %v282_v15  ;;  %v299_v18 = vadd.f32 1e-05, %v283_v16 }
  0x36   : > { %567 = vrsqrt.f32 %v298_v17 }
  0x37   : > { %569 = vrsqrt.f32 %v299_v18 }
  0x40   : > { %v568_v19 = vpop.eup %567 }
  0x41   : > { %304 = vperm.xlu1 %566, %v568_v19   ;;  %v570_v20 = vpop.eup %569 }
  0x45   : > { %309 = vperm.xlu1 %566, %v570_v20  }
  0xad   : > { %v289_v21 = vpop.permute.xlu0 %288 }
  0xae   : > { %v296_v27 = vsub.f32 %v501_v23, %v289_v21 }
  0xb1   : > { %v294_v25 = vpop.permute.xlu0 %293 }
  0xb2   : > { %v297_v28 = vsub.f32 %v502_v24, %v294_v25 }
  0xc0   : > { %v305_v26 = vpop.permute.xlu1 %304 }
  0xc1   : > { %v312_v30 = vmul.f32 %v305_v26, %v296_v27 }
  0xc3   : > { %330 = sbr.rel (!%p696_p6) target bundleno = 210 (0xd2), region = 77 }
  0xc4   : > { %v310_v29 = vpop.permute.xlu1 %309 }
  0xc5   : > { %v313_v31 = vmul.f32 %v310_v29, %v297_v28 }
  0xc7   : > { %v506_v32 = vpack.c.bf16 %v313_v31, %v312_v30 }
  0xc9   : > { %507 = vst [vmem:[%s257_s5] sm:$0xff] %v506_v32  }
  0xd0   : > { %v350_v33 = vld [vmem:[%s257_s5] sm:$0xf]  ;;  %v352_v34 = vld [vmem:[%s257_s5 + $0x4] sm:$0xf] }
  0xd1   : > { %351 = vst [vmem:[%s334_s10] sm:$0xf] %v350_v33  ;;  %353 = vst [vmem:[%s334_s10 + $0x8] sm:$0xf] %v352_v34 }
  0xd2 PF: > { %s13_s18 = sadd.s32 1, %s625_s18   ;;  %s757_s12 = smov %s605_s13 }
  0xd3   : > { %p10_p13 = scmp.ge.s32.totalorder %s13_s18, 6   ;;  %s758_s13 = smov %s704_s27 }
  0xd4   : > { %s759_s14 = smov %s617_s16  ;;  %s760_s15 = smov %s621_s17 }
  0xd5   : > { %s761_s16 = smov %s764_s19  ;;  %s762_s17 = smov %s768_s20 }
  0xd6   :  { %12 = sbr.rel (!%p10_p13) target bundleno = 4 (0x4), region = 155 }

// kernel: _lambda_.9
= control target key start
LH: loop header
LB: loop body
LE: loop exit
PB: predicated region body
PF: predicated region fallthrough
CT: control target
= control target key end

     0   :  { %s633_s9 = smov 0   ;;  %s716_s0 = inlined_call_operand.vmem [shape: bf16[2,256,64], index: 0, kind: input, shape index: {}]   ;;  %s717_s1 = inlined_call_operand.vmem [shape: bf16[32,256], index: 1, kind: input, shape index: {}]   ;;  %s718_s2 = inlined_call_operand.vmem [shape: bf16[2,32,64], index: 2, kind: output, shape index: {}]  }
   0x1 LB: > { %s487_s10 = sadd.s32 4294967295, %s616_s9   ;;  %p491_p0 = scmp.ge.s32.totalorder %s616_s9, 1  ;;  %s616_s9 = sphi %s633_s9, %s12_s9  }
   0x2   : > { %p112_p1 = scmp.lt.s32.totalorder %s616_s9, 3 }
   0x4   : > { %p113_p2 = pnand %p491_p0, %p112_p1 }
   0x5   : > { %p134_p3 = scmp.lt.s32.totalorder (!%p113_p2), %s487_s10, 1  ;;  %v598_v0 = vld [vmem:[%s717_s1 + $0x4] ss:$8 sps:$4 sm:$0xff] (!%p113_p2)   ;;  %v601_v1 = vld [vmem:[%s717_s1 + $0x14] ss:$8 sps:$4 sm:$0xff] (!%p113_p2)   ;;  %vm346_vm0 = vcmask (!%p113_p2), 523264  }
   0x6   : > { %116 = sbr.rel (%p113_p2) target bundleno = 444 (0x1bc), region = 28  ;;  %329 = vmatprep.mubr.bf16.mxu0 (!%p113_p2), %v598_v0  ;;  %337 = vmatprep.mubr.bf16.mxu1 (!%p113_p2), %v601_v1  ;;  %v596_v18 = vld [vmem:[%s717_s1] ss:$8 sps:$4 sm:$0xff] (!%p113_p2)   ;;  %v599_v19 = vld [vmem:[%s717_s1 + $0x10] ss:$8 sps:$4 sm:$0xff] (!%p113_p2)   ;;  %vm427_vm1 = vcmask (!%p113_p2), 519168  }
   0xd   : > { %s720_s10 = smov (!%p134_p3, %s487_s10), 1 }
   0xe   : > { %s522_s15 = sshll.u32 %s720_s10, 7  ;;  %s523_s23 = sshll.u32 %s720_s10, 4 }
   0xf   : > { %s653_s18 = scalar_lea.vmem %s716_s0, %s522_s15  ;;  %s143_s26 = scalar_lea.vmem %s718_s2, %s523_s23 }
  0x10   : > { %v580_v2 = vld [vmem:[%s653_s18 + $0x40] sm:$0xff]   ;;  %v582_v4 = vld [vmem:[%s653_s18 + $0x48] sm:$0xff]   ;;  %v584_v6 = vld [vmem:[%s653_s18 + $0x50] sm:$0xff]  }
  0x11   : > { %v581_v3 = vld [vmem:[%s653_s18] sm:$0xff]   ;;  %528 = vmatprep.subr.bf16.mxu0 %v580_v2  ;;  %556 = vmatprep.subr.bf16.mxu1 %v580_v2  ;;  %v583_v5 = vld [vmem:[%s653_s18 + $0x8] sm:$0xff]   ;;  %v585_v7 = vld [vmem:[%s653_s18 + $0x10] sm:$0xff]  }
  0x12   : > { %529 = vmatpush3.bf16.msra.mxu0 %v581_v3  ;;  %564 = vmatpush3.bf16.msra.mxu1 %v581_v3  ;;  %v586_v8 = vld [vmem:[%s653_s18 + $0x58] sm:$0xff]   ;;  %v588_v10 = vld [vmem:[%s653_s18 + $0x60] sm:$0xff]   ;;  %v590_v12 = vld [vmem:[%s653_s18 + $0x68] sm:$0xff]  }
  0x13   : > { %530 = vmatprep.subr.bf16.mxu0 %v582_v4  ;;  %557 = vmatprep.subr.bf16.mxu1 %v582_v4  ;;  %v587_v9 = vld [vmem:[%s653_s18 + $0x18] sm:$0xff]   ;;  %v589_v11 = vld [vmem:[%s653_s18 + $0x20] sm:$0xff]   ;;  %v591_v13 = vld [vmem:[%s653_s18 + $0x28] sm:$0xff]  }
  0x14   : > { %v592_v14 = vld [vmem:[%s653_s18 + $0x70] sm:$0xff]   ;;  %v594_v16 = vld [vmem:[%s653_s18 + $0x78] sm:$0xff]  }
  0x15   : > { %v593_v15 = vld [vmem:[%s653_s18 + $0x30] sm:$0xff]   ;;  %v595_v17 = vld [vmem:[%s653_s18 + $0x38] sm:$0xff]  }
  0x16   : > { %531 = vmatpush3.bf16.msra.mxu0 %v583_v5  ;;  %565 = vmatpush3.bf16.msra.mxu1 %v583_v5 }
  0x17   : > { %532 = vmatprep.subr.bf16.mxu0 %v584_v6  ;;  %558 = vmatprep.subr.bf16.mxu1 %v584_v6 }
  0x1a   : > { %533 = vmatpush3.bf16.msra.mxu0 %v585_v7  ;;  %566 = vmatpush3.bf16.msra.mxu1 %v585_v7 }
  0x1b   : > { %534 = vmatprep.subr.bf16.mxu0 %v586_v8  ;;  %559 = vmatprep.subr.bf16.mxu1 %v586_v8 }
  0x1e   : > { %535 = vmatpush3.bf16.msra.mxu0 %v587_v9  ;;  %567 = vmatpush3.bf16.msra.mxu1 %v587_v9 }
  0x1f   : > { %536 = vmatprep.subr.bf16.mxu0 %v588_v10  ;;  %560 = vmatprep.subr.bf16.mxu1 %v588_v10 }
  0x22   : > { %537 = vmatpush3.bf16.msra.mxu0 %v589_v11  ;;  %568 = vmatpush3.bf16.msra.mxu1 %v589_v11 }
  0x23   : > { %538 = vmatprep.subr.bf16.mxu0 %v590_v12  ;;  %561 = vmatprep.subr.bf16.mxu1 %v590_v12 }
  0x26   : > { %539 = vmatpush3.bf16.msra.mxu0 %v591_v13  ;;  %569 = vmatpush3.bf16.msra.mxu1 %v591_v13 }
  0x27   : > { %540 = vmatprep.subr.bf16.mxu0 %v592_v14  ;;  %562 = vmatprep.subr.bf16.mxu1 %v592_v14 }
  0x2a   : > { %541 = vmatpush3.bf16.msra.mxu0 %v593_v15  ;;  %570 = vmatpush3.bf16.msra.mxu1 %v593_v15 }
  0x2b   : > { %542 = vmatprep.subr.bf16.mxu0 %v594_v16  ;;  %563 = vmatprep.subr.bf16.mxu1 %v594_v16 }
  0x2e   : > { %543 = vmatpush3.bf16.msra.mxu0 %v595_v17  ;;  %571 = vmatpush3.bf16.msra.mxu1 %v595_v17 }
  0x31   : > { %330 = vmatmul.mubr.bf16.vlgmr.msra.gmra.mrb[0].mxu0 %v596_v18  ;;  %338 = vmatmul.mubr.bf16.vlgmr.msra.gmra.mrb[0].mxu1 %v599_v19 }
 0x104   : > { %v544_v20 = vpop.f32.mrb[0].mxu0  ;;  %v550_v21 = vpop.f32.mrb[0].mxu1 }
 0x105   : > { %v545_v22 = vpop.f32.mrb[1].mxu0  ;;  %v551_v23 = vpop.f32.mrb[1].mxu1 }
 0x106   : > { %v677_v24 = vadd.f32 %v545_v22, %v544_v20  ;;  %v679_v25 = vadd.f32 %v551_v23, %v550_v21  ;;  %v547_v26 = vpop.f32.mrb[2].mxu0  ;;  %v553_v27 = vpop.f32.mrb[2].mxu1 }
 0x107   : > { %v548_v28 = vpop.f32.mrb[3].mxu0  ;;  %v554_v29 = vpop.f32.mrb[3].mxu1 }
 0x108   : > { %v681_v30 = vadd.f32 %v548_v28, %v547_v26  ;;  %v683_v31 = vadd.f32 %v554_v29, %v553_v27  ;;  %v353_v32 = vsel %vm346_vm0, %v679_v25, 0.0  ;;  %v347_v33 = vsel %vm346_vm0, %v677_v24, 0.0 }
 0x109   : > { %354 = vadd.xlane.f32.xlu1 %v353_v32  ;;  %348 = vadd.xlane.f32.xlu0 %v347_v33  ;;  %v363_v37 = vmul.f32 %v677_v24, %v677_v24  ;;  %v365_v41 = vmul.f32 %v679_v25, %v679_v25 }
 0x10a   : > { %v356_v34 = vsel %vm346_vm0, %v683_v31, 0.0  ;;  %v350_v35 = vsel %vm346_vm0, %v681_v30, 0.0  ;;  %v364_v36 = vmul.f32 %v681_v30, %v681_v30  ;;  %v366_v40 = vmul.f32 %v683_v31, %v683_v31 }
 0x10b   : > { %v367_v39 = vsel %vm346_vm0, %v363_v37, 0.0  ;;  %v373_v43 = vsel %vm346_vm0, %v365_v41, 0.0 }
 0x10c   : > { %v370_v38 = vsel %vm346_vm0, %v364_v36, 0.0  ;;  %v376_v42 = vsel %vm346_vm0, %v366_v40, 0.0 }
 0x10d   : > { %357 = vadd.xlane.f32.xlu1 %v356_v34  ;;  %351 = vadd.xlane.f32.xlu0 %v350_v35 }
 0x111   : > { %371 = vadd.xlane.f32.xlu1 %v370_v38  ;;  %368 = vadd.xlane.f32.xlu0 %v367_v39 }
 0x115   : > { %377 = vadd.xlane.f32.xlu1 %v376_v42  ;;  %374 = vadd.xlane.f32.xlu0 %v373_v43 }
 0x196   : > { %v355_v44 = vpop.xlane.xlu1 %354  ;;  %v349_v45 = vpop.xlane.xlu0 %348 }
 0x197   : > { %v359_v48 = vmul.f32 0.015625, %v349_v45  ;;  %v361_v50 = vmul.f32 0.015625, %v355_v44 }
 0x199   : > { %v383_v54 = vmul.f32 %v359_v48, %v359_v48  ;;  %v385_v60 = vmul.f32 %v361_v50, %v361_v50  ;;  %v395_v14 = vsub.f32 %v677_v24, %v359_v48  ;;  %v397_v21 = vsub.f32 %v679_v25, %v361_v50 }
 0x19a   : > { %v358_v46 = vpop.xlane.xlu1 %357  ;;  %v352_v47 = vpop.xlane.xlu0 %351 }
 0x19b   : > { %v360_v49 = vmul.f32 0.015625, %v352_v47  ;;  %v362_v51 = vmul.f32 0.015625, %v358_v46 }
 0x19d   : > { %v384_v55 = vmul.f32 %v360_v49, %v360_v49  ;;  %v386_v61 = vmul.f32 %v362_v51, %v362_v51  ;;  %v396_v12 = vsub.f32 %v681_v30, %v360_v49  ;;  %v398_v18 = vsub.f32 %v683_v31, %v362_v51 }
 0x19e   : > { %v372_v52 = vpop.xlane.xlu1 %371  ;;  %v369_v53 = vpop.xlane.xlu0 %368 }
 0x19f   : > { %v380_v56 = vmul.f32 0.015625, %v372_v52  ;;  %v379_v57 = vmul.f32 0.015625, %v369_v53 }
 0x1a1   : > { %v388_v58 = vsub.f32 %v380_v56, %v384_v55  ;;  %v387_v59 = vsub.f32 %v379_v57, %v383_v54 }
 0x1a2   : > { %v378_v62 = vpop.xlane.xlu1 %377  ;;  %v375_v63 = vpop.xlane.xlu0 %374 }
 0x1a3   : > { %v392_v0 = vmax.f32 %v388_v58, 0.0  ;;  %v391_v1 = vmax.f32 %v387_v59, 0.0  ;;  %v382_v2 = vmul.f32 0.015625, %v378_v62  ;;  %v381_v3 = vmul.f32 0.015625, %v375_v63 }
 0x1a5   : > { %v400_v4 = vadd.f32 1e-05, %v392_v0  ;;  %v399_v5 = vadd.f32 1e-05, %v391_v1  ;;  %v390_v6 = vsub.f32 %v382_v2, %v386_v61  ;;  %v389_v7 = vsub.f32 %v381_v3, %v385_v60 }
 0x1a7   : > { %602 = vrsqrt.f32 %v400_v4  ;;  %v394_v8 = vmax.f32 %v390_v6, 0.0  ;;  %v393_v9 = vmax.f32 %v389_v7, 0.0 }
 0x1a8   : > { %604 = vrsqrt.f32 %v399_v5 }
 0x1a9   : > { %v402_v10 = vadd.f32 1e-05, %v394_v8  ;;  %v401_v11 = vadd.f32 1e-05, %v393_v9 }
 0x1ab   : > { %606 = vrsqrt.f32 %v402_v10 }
 0x1ac   : > { %608 = vrsqrt.f32 %v401_v11 }
 0x1b1   : > { %v603_v13 = vpop.eup %602 }
 0x1b2   : > { %v605_v15 = vpop.eup %604  ;;  %v408_v16 = vmul.f32 %v603_v13, %v396_v12 }
 0x1b3   : > { %v407_v17 = vmul.f32 %v605_v15, %v395_v14 }
 0x1b4   : > { %v525_v19 = vpack.c.bf16 %v408_v16, %v408_v16 }
 0x1b5   : > { %v607_v20 = vpop.eup %606  ;;  %v524_v22 = vpack.c.bf16 %v407_v17, %v407_v17 }
 0x1b6   : > { %v609_v23 = vpop.eup %608  ;;  %429 = vst.msk [vmem:[%s143_s26 + $0x4] sm:$0xf] %vm427_vm1, %v525_v19  ;;  %v410_v26 = vmul.f32 %v607_v20, %v398_v18 }
 0x1b7   : > { %428 = vst.msk [vmem:[%s143_s26] sm:$0xf] %vm427_vm1, %v524_v22  ;;  %v409_v24 = vmul.f32 %v609_v23, %v397_v21 }
 0x1b8   : > { %v527_v27 = vpack.c.bf16 %v410_v26, %v410_v26 }
 0x1b9   : > { %v526_v28 = vpack.c.bf16 %v409_v24, %v409_v24 }
 0x1ba   : > { %431 = vst.msk [vmem:[%s143_s26 + $0xc] sm:$0xf] %vm427_vm1, %v527_v27 }
 0x1bb   : > { %430 = vst.msk [vmem:[%s143_s26 + $0x8] sm:$0xf] %vm427_vm1, %v526_v28 }
 0x1bc PF: > { %s12_s9 = sadd.s32 1, %s616_s9  }
 0x1bd   : > { %p9_p4 = scmp.ge.s32.totalorder %s12_s9, 4  }
 0x1bf   :  { %11 = sbr.rel (!%p9_p4) target bundleno = 1 (0x1), region = 58 }

// kernel: _lambda_.10
= control target key start
LH: loop header
LB: loop body
LE: loop exit
PB: predicated region body
PF: predicated region fallthrough
CT: control target
= control target key end

     0   :  { %s1112_s9 = smov 0   ;;  %s1317_s0 = inlined_call_operand.vmem [shape: bf16[2,512,16], index: 0, kind: input, shape index: {}]   ;;  %s1318_s1 = inlined_call_operand.vmem [shape: bf16[64,512], index: 1, kind: input, shape index: {}]   ;;  %s1319_s2 = inlined_call_operand.vmem [shape: bf16[2,64,16], index: 2, kind: output, shape index: {}]  }
   0x1 LB: > { %s852_s10 = sadd.s32 4294967295, %s1095_s9   ;;  %p856_p0 = scmp.ge.s32.totalorder %s1095_s9, 1  ;;  %s1095_s9 = sphi %s1112_s9, %s12_s9  }
   0x2   : > { %p112_p1 = scmp.lt.s32.totalorder %s1095_s9, 3 }
   0x4   : > { %p113_p2 = pnand %p856_p0, %p112_p1 }
   0x5   : > { %p134_p3 = scmp.lt.s32.totalorder (!%p113_p2), %s852_s10, 1  ;;  %v1051_v0 = vld [vmem:[%s1318_s1 + $0x4] ss:$16 sps:$4 sm:$0xff] (!%p113_p2)   ;;  %v1054_v1 = vld [vmem:[%s1318_s1 + $0xc] ss:$16 sps:$4 sm:$0xff] (!%p113_p2)   ;;  %vm627_vm0 = vcmask (!%p113_p2), 130048  }
   0x6   : > { %116 = sbr.rel (%p113_p2) target bundleno = 467 (0x1d3), region = 28  ;;  %529 = vmatprep.mubr.bf16.mxu0 (!%p113_p2), %v1051_v0  ;;  %594 = vmatprep.mubr.bf16.mxu1 (!%p113_p2), %v1054_v1  ;;  %v1049_v32 = vld [vmem:[%s1318_s1] ss:$16 sps:$4 sm:$0xff] (!%p113_p2)   ;;  %v1052_v34 = vld [vmem:[%s1318_s1 + $0x8] ss:$16 sps:$4 sm:$0xff] (!%p113_p2)   ;;  %vm788_vm1 = vcmask (!%p113_p2), 125952  }
   0x7   : > { %v1055_v36 = vld [vmem:[%s1318_s1 + $0x24] ss:$16 sps:$4 sm:$0xff] (!%p113_p2)   ;;  %v1057_v37 = vld [vmem:[%s1318_s1 + $0x2c] ss:$16 sps:$4 sm:$0xff] (!%p113_p2)   ;;  %v1059_v38 = vld [vmem:[%s1318_s1 + $0x20] ss:$16 sps:$4 sm:$0xff] (!%p113_p2)  }
   0x8   : > { %v1060_v39 = vld [vmem:[%s1318_s1 + $0x28] ss:$16 sps:$4 sm:$0xff] (!%p113_p2)   ;;  %v1061_v40 = vld [vmem:[%s1318_s1 + $0x44] ss:$16 sps:$4 sm:$0xff] (!%p113_p2)   ;;  %v1063_v41 = vld [vmem:[%s1318_s1 + $0x4c] ss:$16 sps:$4 sm:$0xff] (!%p113_p2)  }
   0x9   : > { %v1065_v42 = vld [vmem:[%s1318_s1 + $0x40] ss:$16 sps:$4 sm:$0xff] (!%p113_p2)   ;;  %v1066_v43 = vld [vmem:[%s1318_s1 + $0x48] ss:$16 sps:$4 sm:$0xff] (!%p113_p2)   ;;  %v1067_v44 = vld [vmem:[%s1318_s1 + $0x64] ss:$16 sps:$4 sm:$0xff] (!%p113_p2)  }
   0xa   : > { %v1069_v45 = vld [vmem:[%s1318_s1 + $0x6c] ss:$16 sps:$4 sm:$0xff] (!%p113_p2)   ;;  %v1071_v46 = vld [vmem:[%s1318_s1 + $0x60] ss:$16 sps:$4 sm:$0xff] (!%p113_p2)   ;;  %v1072_v47 = vld [vmem:[%s1318_s1 + $0x68] ss:$16 sps:$4 sm:$0xff] (!%p113_p2)  }
   0xd   : > { %s1321_s10 = smov (!%p134_p3, %s852_s10), 1 }
   0xe   : > { %s919_s15 = sshll.u32 %s1321_s10, 8  ;;  %s920_s21 = sshll.u32 %s1321_s10, 5 }
   0xf   : > { %s1132_s18 = scalar_lea.vmem %s1317_s0, %s919_s15  ;;  %s1286_s10 = scalar_lea.vmem %s1319_s2, %s920_s21 }
  0x10   : > { %v1017_v2 = vld [vmem:[%s1132_s18 + $0x40] sm:$0xff]   ;;  %v1021_v6 = vld [vmem:[%s1132_s18 + $0x48] sm:$0xff]   ;;  %v1025_v10 = vld [vmem:[%s1132_s18 + $0x50] sm:$0xff]  }
  0x11   : > { %v1018_v3 = vld [vmem:[%s1132_s18 + $0xc0] sm:$0xff]   ;;  %929 = vmatprep.subr.bf16.mxu0 %v1017_v2  ;;  %v1022_v7 = vld [vmem:[%s1132_s18 + $0xc8] sm:$0xff]   ;;  %v1026_v11 = vld [vmem:[%s1132_s18 + $0xd0] sm:$0xff]  }
  0x12   : > { %v1019_v4 = vld [vmem:[%s1132_s18] sm:$0xff]   ;;  %969 = vmatprep.subr.bf16.mxu1 %v1018_v3  ;;  %v1023_v8 = vld [vmem:[%s1132_s18 + $0x8] sm:$0xff]   ;;  %v1027_v12 = vld [vmem:[%s1132_s18 + $0x10] sm:$0xff]  }
  0x13   : > { %v1020_v5 = vld [vmem:[%s1132_s18 + $0x80] sm:$0xff]   ;;  %930 = vmatpush3.bf16.msra.mxu0 %v1019_v4  ;;  %v1024_v9 = vld [vmem:[%s1132_s18 + $0x88] sm:$0xff]   ;;  %v1028_v13 = vld [vmem:[%s1132_s18 + $0x90] sm:$0xff]  }
  0x14   : > { %970 = vmatpush3.bf16.msra.mxu1 %v1020_v5  ;;  %931 = vmatprep.subr.bf16.mxu0 %v1021_v6  ;;  %v1029_v14 = vld [vmem:[%s1132_s18 + $0x58] sm:$0xff]   ;;  %v1033_v18 = vld [vmem:[%s1132_s18 + $0x60] sm:$0xff]   ;;  %v1037_v22 = vld [vmem:[%s1132_s18 + $0x68] sm:$0xff]  }
  0x15   : > { %971 = vmatprep.subr.bf16.mxu1 %v1022_v7  ;;  %v1030_v15 = vld [vmem:[%s1132_s18 + $0xd8] sm:$0xff]   ;;  %v1034_v19 = vld [vmem:[%s1132_s18 + $0xe0] sm:$0xff]   ;;  %v1038_v23 = vld [vmem:[%s1132_s18 + $0xe8] sm:$0xff]  }
  0x16   : > { %v1031_v16 = vld [vmem:[%s1132_s18 + $0x18] sm:$0xff]   ;;  %v1035_v20 = vld [vmem:[%s1132_s18 + $0x20] sm:$0xff]   ;;  %v1039_v24 = vld [vmem:[%s1132_s18 + $0x28] sm:$0xff]  }
  0x17   : > { %932 = vmatpush3.bf16.msra.mxu0 %v1023_v8  ;;  %v1032_v17 = vld [vmem:[%s1132_s18 + $0x98] sm:$0xff]   ;;  %v1036_v21 = vld [vmem:[%s1132_s18 + $0xa0] sm:$0xff]   ;;  %v1040_v25 = vld [vmem:[%s1132_s18 + $0xa8] sm:$0xff]  }
  0x18   : > { %972 = vmatpush3.bf16.msra.mxu1 %v1024_v9  ;;  %933 = vmatprep.subr.bf16.mxu0 %v1025_v10  ;;  %v1041_v26 = vld [vmem:[%s1132_s18 + $0x70] sm:$0xff]   ;;  %v1045_v30 = vld [vmem:[%s1132_s18 + $0x78] sm:$0xff]  }
  0x19   : > { %973 = vmatprep.subr.bf16.mxu1 %v1026_v11  ;;  %v1042_v27 = vld [vmem:[%s1132_s18 + $0xf0] sm:$0xff]   ;;  %v1046_v31 = vld [vmem:[%s1132_s18 + $0xf8] sm:$0xff]  }
  0x1a   : > { %v1043_v28 = vld [vmem:[%s1132_s18 + $0x30] sm:$0xff]   ;;  %v1047_v33 = vld [vmem:[%s1132_s18 + $0x38] sm:$0xff]  }
  0x1b   : > { %934 = vmatpush3.bf16.msra.mxu0 %v1027_v12  ;;  %v1044_v29 = vld [vmem:[%s1132_s18 + $0xb0] sm:$0xff]   ;;  %v1048_v35 = vld [vmem:[%s1132_s18 + $0xb8] sm:$0xff]  }
  0x1c   : > { %974 = vmatpush3.bf16.msra.mxu1 %v1028_v13  ;;  %935 = vmatprep.subr.bf16.mxu0 %v1029_v14 }
  0x1d   : > { %975 = vmatprep.subr.bf16.mxu1 %v1030_v15 }
  0x1f   : > { %936 = vmatpush3.bf16.msra.mxu0 %v1031_v16 }
  0x20   : > { %976 = vmatpush3.bf16.msra.mxu1 %v1032_v17  ;;  %937 = vmatprep.subr.bf16.mxu0 %v1033_v18 }
  0x21   : > { %977 = vmatprep.subr.bf16.mxu1 %v1034_v19 }
  0x23   : > { %938 = vmatpush3.bf16.msra.mxu0 %v1035_v20 }
  0x24   : > { %978 = vmatpush3.bf16.msra.mxu1 %v1036_v21  ;;  %939 = vmatprep.subr.bf16.mxu0 %v1037_v22 }
  0x25   : > { %979 = vmatprep.subr.bf16.mxu1 %v1038_v23 }
  0x27   : > { %940 = vmatpush3.bf16.msra.mxu0 %v1039_v24 }
  0x28   : > { %980 = vmatpush3.bf16.msra.mxu1 %v1040_v25  ;;  %941 = vmatprep.subr.bf16.mxu0 %v1041_v26 }
  0x29   : > { %981 = vmatprep.subr.bf16.mxu1 %v1042_v27 }
  0x2b   : > { %942 = vmatpush3.bf16.msra.mxu0 %v1043_v28 }
  0x2c   : > { %982 = vmatpush3.bf16.msra.mxu1 %v1044_v29  ;;  %943 = vmatprep.subr.bf16.mxu0 %v1045_v30 }
  0x2d   : > { %983 = vmatprep.subr.bf16.mxu1 %v1046_v31 }
  0x2f   : > { %944 = vmatpush3.bf16.msra.mxu0 %v1047_v33 }
  0x30   : > { %984 = vmatpush3.bf16.msra.mxu1 %v1048_v35 }
  0x32   : > { %530 = vmatmul.mubr.bf16.vlgmr.msra.gmra.mrb[0].mxu0 %v1049_v32 }
  0x33   : > { %595 = vmatmul.mubr.bf16.vlgmr.msra.gmra.mrb[0].mxu1 %v1052_v34  ;;  %537 = vmatprep.mubr.bf16.mxu0 %v1055_v36 }
  0x34   : > { %602 = vmatprep.mubr.bf16.mxu1 %v1057_v37 }
  0x3a   : > { %538 = vmatmul.mubr.bf16.gmra.mrb[4].mxu0 %v1059_v38 }
  0x3b   : > { %603 = vmatmul.mubr.bf16.gmra.mrb[4].mxu1 %v1060_v39  ;;  %545 = vmatprep.mubr.bf16.mxu0 %v1061_v40 }
  0x3c   : > { %610 = vmatprep.mubr.bf16.mxu1 %v1063_v41 }
  0x42   : > { %546 = vmatmul.mubr.bf16.gmra.mrb[8].mxu0 %v1065_v42 }
  0x43   : > { %611 = vmatmul.mubr.bf16.gmra.mrb[8].mxu1 %v1066_v43  ;;  %553 = vmatprep.mubr.bf16.mxu0 %v1067_v44 }
  0x44   : > { %618 = vmatprep.mubr.bf16.mxu1 %v1069_v45 }
  0x4a   : > { %554 = vmatmul.mubr.bf16.gmra.mrb[12].mxu0 %v1071_v46 }
  0x4b   : > { %619 = vmatmul.mubr.bf16.gmra.mrb[12].mxu1 %v1072_v47 }
 0x105   : > { %v945_v48 = vpop.f32.mrb[0].mxu0 }
 0x106   : > { %v985_v49 = vpop.f32.mrb[0].mxu1  ;;  %v946_v50 = vpop.f32.mrb[1].mxu0 }
 0x107   : > { %v947_v51 = vadd.f32 %v946_v50, %v945_v48  ;;  %v986_v52 = vpop.f32.mrb[1].mxu1  ;;  %v948_v53 = vpop.f32.mrb[2].mxu0 }
 0x108   : > { %v987_v54 = vadd.f32 %v986_v52, %v985_v49  ;;  %v988_v55 = vpop.f32.mrb[2].mxu1  ;;  %v949_v56 = vpop.f32.mrb[3].mxu0 }
 0x109   : > { %v950_v57 = vadd.f32 %v949_v56, %v948_v53  ;;  %v989_v58 = vpop.f32.mrb[3].mxu1 }
 0x10a   : > { %v1208_v59 = vadd.f32 %v987_v54, %v947_v51  ;;  %v990_v60 = vadd.f32 %v989_v58, %v988_v55 }
 0x10c   : > { %v1210_v61 = vadd.f32 %v990_v60, %v950_v57  ;;  %v628_v62 = vsel %vm627_vm0, %v1208_v59, 0.0  ;;  %v660_v11 = vmul.f32 %v1208_v59, %v1208_v59 }
 0x10d   : > { %629 = vadd.xlane.f32.xlu0 %v628_v62  ;;  %v951_v63 = vpop.f32.mrb[4].mxu0 }
 0x10e   : > { %v991_v0 = vpop.f32.mrb[4].mxu1  ;;  %v952_v1 = vpop.f32.mrb[5].mxu0  ;;  %v661_v2 = vmul.f32 %v1210_v61, %v1210_v61  ;;  %v631_v10 = vsel %vm627_vm0, %v1210_v61, 0.0  ;;  %v668_v18 = vsel %vm627_vm0, %v660_v11, 0.0 }
 0x10f   : > { %v953_v3 = vadd.f32 %v952_v1, %v951_v63  ;;  %v992_v4 = vpop.f32.mrb[5].mxu1  ;;  %v954_v5 = vpop.f32.mrb[6].mxu0 }
 0x110   : > { %v993_v6 = vadd.f32 %v992_v4, %v991_v0  ;;  %v994_v7 = vpop.f32.mrb[6].mxu1  ;;  %v955_v8 = vpop.f32.mrb[7].mxu0  ;;  %v671_v9 = vsel %vm627_vm0, %v661_v2, 0.0 }
 0x111   : > { %v956_v12 = vadd.f32 %v955_v8, %v954_v5  ;;  %v995_v13 = vpop.f32.mrb[7].mxu1  ;;  %672 = vadd.xlane.f32.xlu1 %v671_v9  ;;  %632 = vadd.xlane.f32.xlu0 %v631_v10 }
 0x112   : > { %v1221_v14 = vadd.f32 %v993_v6, %v953_v3  ;;  %v996_v15 = vadd.f32 %v995_v13, %v994_v7 }
 0x114   : > { %v1223_v16 = vadd.f32 %v996_v15, %v956_v12  ;;  %v634_v17 = vsel %vm627_vm0, %v1221_v14, 0.0  ;;  %v662_v19 = vmul.f32 %v1221_v14, %v1221_v14 }
 0x115   : > { %635 = vadd.xlane.f32.xlu1 %v634_v17  ;;  %669 = vadd.xlane.f32.xlu0 %v668_v18  ;;  %v957_v20 = vpop.f32.mrb[8].mxu0 }
 0x116   : > { %v997_v21 = vpop.f32.mrb[8].mxu1  ;;  %v958_v22 = vpop.f32.mrb[9].mxu0  ;;  %v637_v29 = vsel %vm627_vm0, %v1223_v16, 0.0  ;;  %v674_v30 = vsel %vm627_vm0, %v662_v19, 0.0  ;;  %v663_v31 = vmul.f32 %v1223_v16, %v1223_v16 }
 0x117   : > { %v959_v23 = vadd.f32 %v958_v22, %v957_v20  ;;  %v998_v24 = vpop.f32.mrb[9].mxu1  ;;  %v960_v25 = vpop.f32.mrb[10].mxu0 }
 0x118   : > { %v999_v26 = vadd.f32 %v998_v24, %v997_v21  ;;  %v1000_v27 = vpop.f32.mrb[10].mxu1  ;;  %v961_v28 = vpop.f32.mrb[11].mxu0  ;;  %v677_v37 = vsel %vm627_vm0, %v663_v31, 0.0 }
 0x119   : > { %v962_v32 = vadd.f32 %v961_v28, %v960_v25  ;;  %v1001_v33 = vpop.f32.mrb[11].mxu1  ;;  %638 = vadd.xlane.f32.xlu1 %v637_v29  ;;  %675 = vadd.xlane.f32.xlu0 %v674_v30 }
 0x11a   : > { %v1235_v34 = vadd.f32 %v999_v26, %v959_v23  ;;  %v1002_v35 = vadd.f32 %v1001_v33, %v1000_v27 }
 0x11c   : > { %v1237_v36 = vadd.f32 %v1002_v35, %v962_v32  ;;  %v640_v38 = vsel %vm627_vm0, %v1235_v34, 0.0  ;;  %v664_v39 = vmul.f32 %v1235_v34, %v1235_v34 }
 0x11d   : > { %678 = vadd.xlane.f32.xlu1 %v677_v37  ;;  %641 = vadd.xlane.f32.xlu0 %v640_v38  ;;  %v963_v40 = vpop.f32.mrb[12].mxu0 }
 0x11e   : > { %v1003_v41 = vpop.f32.mrb[12].mxu1  ;;  %v964_v42 = vpop.f32.mrb[13].mxu0  ;;  %v680_v43 = vsel %vm627_vm0, %v664_v39, 0.0  ;;  %v643_v50 = vsel %vm627_vm0, %v1237_v36, 0.0  ;;  %v665_v51 = vmul.f32 %v1237_v36, %v1237_v36 }
 0x11f   : > { %v965_v44 = vadd.f32 %v964_v42, %v963_v40  ;;  %v1004_v45 = vpop.f32.mrb[13].mxu1  ;;  %v966_v46 = vpop.f32.mrb[14].mxu0 }
 0x120   : > { %v1005_v47 = vadd.f32 %v1004_v45, %v1003_v41  ;;  %v1006_v48 = vpop.f32.mrb[14].mxu1  ;;  %v967_v49 = vpop.f32.mrb[15].mxu0  ;;  %v683_v57 = vsel %vm627_vm0, %v665_v51, 0.0 }
 0x121   : > { %v968_v52 = vadd.f32 %v967_v49, %v966_v46  ;;  %v1007_v53 = vpop.f32.mrb[15].mxu1  ;;  %644 = vadd.xlane.f32.xlu1 %v643_v50  ;;  %681 = vadd.xlane.f32.xlu0 %v680_v43 }
 0x122   : > { %v1249_v54 = vadd.f32 %v1005_v47, %v965_v44  ;;  %v1008_v55 = vadd.f32 %v1007_v53, %v1006_v48 }
 0x124   : > { %v1251_v56 = vadd.f32 %v1008_v55, %v968_v52  ;;  %v646_v58 = vsel %vm627_vm0, %v1249_v54, 0.0  ;;  %v666_v60 = vmul.f32 %v1249_v54, %v1249_v54 }
 0x125   : > { %684 = vadd.xlane.f32.xlu1 %v683_v57  ;;  %647 = vadd.xlane.f32.xlu0 %v646_v58 }
 0x126   : > { %v686_v62 = vsel %vm627_vm0, %v666_v60, 0.0  ;;  %v649_v63 = vsel %vm627_vm0, %v1251_v56, 0.0  ;;  %v667_v0 = vmul.f32 %v1251_v56, %v1251_v56 }
 0x128   : > { %v689_v1 = vsel %vm627_vm0, %v667_v0, 0.0 }
 0x129   : > { %650 = vadd.xlane.f32.xlu1 %v649_v63  ;;  %687 = vadd.xlane.f32.xlu0 %v686_v62 }
 0x12d   : > { %690 = vadd.xlane.f32.xlu1 %v689_v1 }
 0x19a   : > { %v630_v2 = vpop.xlane.xlu0 %629 }
 0x19b   : > { %v652_v5 = vmul.f32 0.0625, %v630_v2 }
 0x19d   : > { %v700_v11 = vmul.f32 %v652_v5, %v652_v5  ;;  %v724_v55 = vsub.f32 %v1208_v59, %v652_v5 }
 0x19e   : > { %v673_v3 = vpop.xlane.xlu1 %672  ;;  %v633_v4 = vpop.xlane.xlu0 %632 }
 0x19f   : > { %v653_v6 = vmul.f32 0.0625, %v633_v4  ;;  %v693_v7 = vmul.f32 0.0625, %v673_v3 }
 0x1a1   : > { %v701_v8 = vmul.f32 %v653_v6, %v653_v6  ;;  %v725_v46 = vsub.f32 %v1210_v61, %v653_v6 }
 0x1a2   : > { %v636_v9 = vpop.xlane.xlu1 %635  ;;  %v670_v10 = vpop.xlane.xlu0 %669 }
 0x1a3   : > { %v709_v12 = vsub.f32 %v693_v7, %v701_v8  ;;  %v692_v13 = vmul.f32 0.0625, %v670_v10  ;;  %v1264_v15 = vmul.f32 0.0625, %v636_v9 }
 0x1a5   : > { %v717_v17 = vmax.f32 %v709_v12, 0.0  ;;  %v708_v18 = vsub.f32 %v692_v13, %v700_v11  ;;  %v702_v25 = vmul.f32 %v1264_v15, %v1264_v15  ;;  %v726_v6 = vsub.f32 %v1221_v14, %v1264_v15 }
 0x1a6   : > { %v639_v19 = vpop.xlane.xlu1 %638  ;;  %v676_v20 = vpop.xlane.xlu0 %675 }
 0x1a7   : > { %v733_v21 = vadd.f32 1e-05, %v717_v17  ;;  %v716_v22 = vmax.f32 %v708_v18, 0.0  ;;  %v1266_v23 = vmul.f32 0.0625, %v639_v19  ;;  %v694_v24 = vmul.f32 0.0625, %v676_v20 }
 0x1a9   : > { %1073 = vrsqrt.f32 %v733_v21  ;;  %v732_v26 = vadd.f32 1e-05, %v716_v22  ;;  %v710_v27 = vsub.f32 %v694_v24, %v702_v25  ;;  %v703_v30 = vmul.f32 %v1266_v23, %v1266_v23 }
 0x1aa   : > { %v679_v28 = vpop.xlane.xlu1 %678  ;;  %v642_v29 = vpop.xlane.xlu0 %641  ;;  %v727_v18 = vsub.f32 %v1223_v16, %v1266_v23 }
 0x1ab   : > { %1075 = vrsqrt.f32 %v732_v26  ;;  %v695_v31 = vmul.f32 0.0625, %v679_v28  ;;  %v1272_v32 = vmul.f32 0.0625, %v642_v29  ;;  %v718_v33 = vmax.f32 %v710_v27, 0.0 }
 0x1ad   : > { %v711_v35 = vsub.f32 %v695_v31, %v703_v30  ;;  %v704_v37 = vmul.f32 %v1272_v32, %v1272_v32  ;;  %v734_v38 = vadd.f32 1e-05, %v718_v33  ;;  %v728_v25 = vsub.f32 %v1235_v34, %v1272_v32 }
 0x1ae   : > { %v645_v39 = vpop.xlane.xlu1 %644  ;;  %v682_v40 = vpop.xlane.xlu0 %681 }
 0x1af   : > { %v719_v41 = vmax.f32 %v711_v35, 0.0  ;;  %v1276_v42 = vmul.f32 0.0625, %v645_v39  ;;  %v696_v43 = vmul.f32 0.0625, %v682_v40  ;;  %1077 = vrsqrt.f32 %v734_v38 }
 0x1b1   : > { %v735_v44 = vadd.f32 1e-05, %v719_v41  ;;  %v712_v45 = vsub.f32 %v696_v43, %v704_v37  ;;  %v705_v47 = vmul.f32 %v1276_v42, %v1276_v42  ;;  %v729_v23 = vsub.f32 %v1237_v36, %v1276_v42 }
 0x1b2   : > { %v685_v48 = vpop.xlane.xlu1 %684  ;;  %v648_v49 = vpop.xlane.xlu0 %647 }
 0x1b3   : > { %v1074_v50 = vpop.eup %1073  ;;  %1079 = vrsqrt.f32 %v735_v44  ;;  %v720_v51 = vmax.f32 %v712_v45, 0.0  ;;  %v697_v52 = vmul.f32 0.0625, %v685_v48  ;;  %v658_v53 = vmul.f32 0.0625, %v648_v49 }
 0x1b4   : > { %v749_v57 = vmul.f32 %v1074_v50, %v725_v46 }
 0x1b5   : > { %v1076_v58 = vpop.eup %1075  ;;  %v736_v61 = vadd.f32 1e-05, %v720_v51  ;;  %v713_v60 = vsub.f32 %v697_v52, %v705_v47  ;;  %v706_v62 = vmul.f32 %v658_v53, %v658_v53  ;;  %v730_v33 = vsub.f32 %v1249_v54, %v658_v53 }
 0x1b6   : > { %v922_v63 = vpack.c.bf16 %v749_v57, %v749_v57  ;;  %v748_v0 = vmul.f32 %v1076_v58, %v724_v55  ;;  %v651_v1 = vpop.xlane.xlu1 %650  ;;  %v688_v2 = vpop.xlane.xlu0 %687 }
 0x1b7   : > { %1081 = vrsqrt.f32 %v736_v61  ;;  %v721_v3 = vmax.f32 %v713_v60, 0.0  ;;  %v659_v59 = vmul.f32 0.0625, %v651_v1  ;;  %v698_v4 = vmul.f32 0.0625, %v688_v2 }
 0x1b8   : > { %790 = vst.msk [vmem:[%s1286_s10 + $0x4] sm:$0xf] %vm788_vm1, %v922_v63  ;;  %v921_v5 = vpack.c.bf16 %v748_v0, %v748_v0 }
 0x1b9   : > { %v737_v7 = vadd.f32 1e-05, %v721_v3  ;;  %v714_v8 = vsub.f32 %v698_v4, %v706_v62  ;;  %v1078_v9 = vpop.eup %1077  ;;  %v707_v10 = vmul.f32 %v659_v59, %v659_v59  ;;  %v731_v35 = vsub.f32 %v1251_v56, %v659_v59 }
 0x1ba   : > { %789 = vst.msk [vmem:[%s1286_s10] sm:$0xf] %vm788_vm1, %v921_v5  ;;  %v691_v11 = vpop.xlane.xlu1 %690  ;;  %v750_v12 = vmul.f32 %v1078_v9, %v726_v6 }
 0x1bb   : > { %1083 = vrsqrt.f32 %v737_v7  ;;  %v722_v13 = vmax.f32 %v714_v8, 0.0  ;;  %v699_v17 = vmul.f32 0.0625, %v691_v11 }
 0x1bc   : > { %v923_v20 = vpack.c.bf16 %v750_v12, %v750_v12 }
 0x1bd   : > { %v1080_v19 = vpop.eup %1079  ;;  %v738_v21 = vadd.f32 1e-05, %v722_v13  ;;  %v715_v14 = vsub.f32 %v699_v17, %v707_v10 }
 0x1be   : > { %v751_v15 = vmul.f32 %v1080_v19, %v727_v18  ;;  %791 = vst.msk [vmem:[%s1286_s10 + $0x8] sm:$0xf] %vm788_vm1, %v923_v20 }
 0x1bf   : > { %1085 = vrsqrt.f32 %v738_v21  ;;  %v723_v22 = vmax.f32 %v715_v14, 0.0 }
 0x1c0   : > { %v924_v24 = vpack.c.bf16 %v751_v15, %v751_v15 }
 0x1c1   : > { %v1082_v26 = vpop.eup %1081  ;;  %v739_v27 = vadd.f32 1e-05, %v723_v22 }
 0x1c2   : > { %792 = vst.msk [vmem:[%s1286_s10 + $0xc] sm:$0xf] %vm788_vm1, %v924_v24  ;;  %v752_v16 = vmul.f32 %v1082_v26, %v728_v25 }
 0x1c3   : > { %1087 = vrsqrt.f32 %v739_v27 }
 0x1c4   : > { %v925_v28 = vpack.c.bf16 %v752_v16, %v752_v16 }
 0x1c5   : > { %v1084_v29 = vpop.eup %1083 }
 0x1c6   : > { %793 = vst.msk [vmem:[%s1286_s10 + $0x10] sm:$0xf] %vm788_vm1, %v925_v28  ;;  %v753_v30 = vmul.f32 %v1084_v29, %v729_v23 }
 0x1c8   : > { %v926_v31 = vpack.c.bf16 %v753_v30, %v753_v30 }
 0x1c9   : > { %v1086_v34 = vpop.eup %1085 }
 0x1ca   : > { %794 = vst.msk [vmem:[%s1286_s10 + $0x14] sm:$0xf] %vm788_vm1, %v926_v31  ;;  %v754_v32 = vmul.f32 %v1086_v34, %v730_v33 }
 0x1cc   : > { %v927_v37 = vpack.c.bf16 %v754_v32, %v754_v32 }
 0x1cd   : > { %v1088_v38 = vpop.eup %1087 }
 0x1ce   : > { %795 = vst.msk [vmem:[%s1286_s10 + $0x18] sm:$0xf] %vm788_vm1, %v927_v37  ;;  %v755_v36 = vmul.f32 %v1088_v38, %v731_v35 }
 0x1d0   : > { %v928_v39 = vpack.c.bf16 %v755_v36, %v755_v36 }
 0x1d2   : > { %796 = vst.msk [vmem:[%s1286_s10 + $0x1c] sm:$0xf] %vm788_vm1, %v928_v39 }
 0x1d3 PF: > { %s12_s9 = sadd.s32 1, %s1095_s9  }
 0x1d4   : > { %p9_p4 = scmp.ge.s32.totalorder %s12_s9, 4  }
 0x1d6   :  { %11 = sbr.rel (!%p9_p4) target bundleno = 1 (0x1), region = 58 }

// kernel: _lambda_.11
= control target key start
LH: loop header
LB: loop body
LE: loop exit
PB: predicated region body
PF: predicated region fallthrough
CT: control target
= control target key end

     0   :  { %v991_v22 = vmov 1966171168   ;;  %v158_v24 = vlaneseq  ;;  %vm761_vm0 = vcmask 1024   ;;  %s1226_s1 = inlined_call_operand.vmem [shape: bf16[1024,1], index: 1, kind: input, shape index: {}]   ;;  %s1227_s0 = inlined_call_operand.vmem [shape: bf16[2,1024], index: 0, kind: input, shape index: {}]   ;;  %s1228_s2 = inlined_call_operand.<no memory space> [shape: f32[1,1], index: 2, kind: input, shape index: {}]   ;;  %s1229_s3 = inlined_call_operand.vmem [shape: f32[2,1], index: 3, kind: output, shape index: {}]  }
   0x1   :  { %v922_v0 = vld [vmem:[%s1226_s1 + $0x40] sm:$0xff]   ;;  %v926_v4 = vld [vmem:[%s1226_s1 + $0x48] sm:$0xff]   ;;  %v930_v8 = vld [vmem:[%s1226_s1 + $0x50] sm:$0xff]   ;;  %v156_v23 = vunpack.c.l.s4 %v991_v22 }
   0x2   :  { %v923_v1 = vld [vmem:[%s1226_s1 + $0xc0] sm:$0xff]   ;;  %833 = vmatprep.subr.bf16.mxu0 %v922_v0  ;;  %v927_v5 = vld [vmem:[%s1226_s1 + $0xc8] sm:$0xff]   ;;  %v931_v9 = vld [vmem:[%s1226_s1 + $0xd0] sm:$0xff]   ;;  %v159_v30 = vshrl.u32 %v158_v24, 7 }
   0x3   :  { %v924_v2 = vld [vmem:[%s1226_s1] sm:$0xff]   ;;  %855 = vmatprep.subr.bf16.mxu1 %v923_v1  ;;  %v928_v6 = vld [vmem:[%s1226_s1 + $0x8] sm:$0xff]   ;;  %v932_v10 = vld [vmem:[%s1226_s1 + $0x10] sm:$0xff]   ;;  %v157_v29 = vunpack.c.0.s8 %v156_v23 }
   0x4   :  { %v925_v3 = vld [vmem:[%s1226_s1 + $0x80] sm:$0xff]   ;;  %834 = vmatpush3.bf16.msra.mxu0 %v924_v2  ;;  %v929_v7 = vld [vmem:[%s1226_s1 + $0x88] sm:$0xff]   ;;  %v933_v11 = vld [vmem:[%s1226_s1 + $0x90] sm:$0xff]  }
   0x5   :  { %856 = vmatpush3.bf16.msra.mxu1 %v925_v3  ;;  %835 = vmatprep.subr.bf16.mxu0 %v926_v4  ;;  %v934_v12 = vld [vmem:[%s1226_s1 + $0x58] sm:$0xff]   ;;  %v938_v16 = vld [vmem:[%s1226_s1 + $0x60] sm:$0xff]   ;;  %v942_v20 = vld [vmem:[%s1226_s1 + $0x68] sm:$0xff]   ;;  %v1102_v35 = vsub.s32 %v157_v29, %v159_v30 }
   0x6   :  { %857 = vmatprep.subr.bf16.mxu1 %v927_v5  ;;  %v935_v13 = vld [vmem:[%s1226_s1 + $0xd8] sm:$0xff]   ;;  %v939_v17 = vld [vmem:[%s1226_s1 + $0xe0] sm:$0xff]   ;;  %v943_v21 = vld [vmem:[%s1226_s1 + $0xe8] sm:$0xff]  }
   0x7   :  { %v936_v14 = vld [vmem:[%s1226_s1 + $0x18] sm:$0xff]   ;;  %v940_v18 = vld [vmem:[%s1226_s1 + $0x20] sm:$0xff]   ;;  %v944_v25 = vld [vmem:[%s1226_s1 + $0x28] sm:$0xff]  }
   0x8   :  { %836 = vmatpush3.bf16.msra.mxu0 %v928_v6  ;;  %v937_v15 = vld [vmem:[%s1226_s1 + $0x98] sm:$0xff]   ;;  %v941_v19 = vld [vmem:[%s1226_s1 + $0xa0] sm:$0xff]   ;;  %v945_v26 = vld [vmem:[%s1226_s1 + $0xa8] sm:$0xff]  }
   0x9   :  { %858 = vmatpush3.bf16.msra.mxu1 %v929_v7  ;;  %837 = vmatprep.subr.bf16.mxu0 %v930_v8  ;;  %v946_v27 = vld [vmem:[%s1226_s1 + $0x70] sm:$0xff]   ;;  %v950_v33 = vld [vmem:[%s1226_s1 + $0x78] sm:$0xff]   ;;  %v17_v38 = vld [vmem:[%s1227_s0] sm:$0xff] }
   0xa   :  { %859 = vmatprep.subr.bf16.mxu1 %v931_v9  ;;  %v947_v28 = vld [vmem:[%s1226_s1 + $0xf0] sm:$0xff]   ;;  %v951_v34 = vld [vmem:[%s1226_s1 + $0xf8] sm:$0xff]   ;;  %v154_v39 = vcombine.high %v17_v38, %v17_v38  ;;  %v161_v40 = vrot.slane %v17_v38, %v1102_v35  ;;  %v955_v41 = vld [vmem:[%s1226_s1 + $0x140] sm:$0xff]  }
   0xb   :  { %v948_v31 = vld [vmem:[%s1226_s1 + $0x30] sm:$0xff]   ;;  %v952_v36 = vld [vmem:[%s1226_s1 + $0x38] sm:$0xff]   ;;  %v956_v42 = vld [vmem:[%s1226_s1 + $0x1c0] sm:$0xff]  }
   0xc   :  { %838 = vmatpush3.bf16.msra.mxu0 %v932_v10  ;;  %v949_v32 = vld [vmem:[%s1226_s1 + $0xb0] sm:$0xff]   ;;  %v953_v37 = vld [vmem:[%s1226_s1 + $0xb8] sm:$0xff]   ;;  %v169_v43 = vcombine.high %v161_v40, %v161_v40  ;;  %v177_v44 = vrot.slane %v161_v40, %v1102_v35  ;;  %v1122_v45 = vrot.slane %v154_v39, %v1102_v35  ;;  %v957_v47 = vld [vmem:[%s1226_s1 + $0x100] sm:$0xff]  }
   0xd   :  { %860 = vmatpush3.bf16.msra.mxu1 %v933_v11  ;;  %839 = vmatprep.subr.bf16.mxu0 %v934_v12  ;;  %v959_v50 = vld [vmem:[%s1226_s1 + $0x148] sm:$0xff]   ;;  %v958_v52 = vld [vmem:[%s1226_s1 + $0x180] sm:$0xff]   ;;  %v963_v57 = vld [vmem:[%s1226_s1 + $0x150] sm:$0xff]  }
   0xe   :  { %861 = vmatprep.subr.bf16.mxu1 %v935_v13  ;;  %v191_v46 = vrot.slane %v169_v43, %v1102_v35  ;;  %v170_v48 = vcombine.high %v1122_v45, %v1122_v45  ;;  %v199_v49 = vcombine.high %v177_v44, %v177_v44  ;;  %v960_v54 = vld [vmem:[%s1226_s1 + $0x1c8] sm:$0xff]   ;;  %v964_v59 = vld [vmem:[%s1226_s1 + $0x1d0] sm:$0xff]   ;;  %v967_v61 = vld [vmem:[%s1226_s1 + $0x158] sm:$0xff]  }
   0xf   :  { %v961_v55 = vld [vmem:[%s1226_s1 + $0x108] sm:$0xff]   ;;  %v965_v60 = vld [vmem:[%s1226_s1 + $0x110] sm:$0xff]   ;;  %v968_v63 = vld [vmem:[%s1226_s1 + $0x1d8] sm:$0xff]  }
  0x10   :  { %840 = vmatpush3.bf16.msra.mxu0 %v936_v14  ;;  %627 = vmatprep.mubr.bf16.mxu0 %v191_v46  ;;  %v201_v51 = vcombine.high %v191_v46, %v191_v46  ;;  %v198_v53 = vrot.slane %v170_v48, %v1102_v35  ;;  %v962_v58 = vld [vmem:[%s1226_s1 + $0x188] sm:$0xff]   ;;  %v966_v62 = vld [vmem:[%s1226_s1 + $0x190] sm:$0xff]   ;;  %v969_v0 = vld [vmem:[%s1226_s1 + $0x118] sm:$0xff]  }
  0x11   :  { %862 = vmatpush3.bf16.msra.mxu1 %v937_v15  ;;  %841 = vmatprep.subr.bf16.mxu0 %v938_v16  ;;  %v971_v1 = vld [vmem:[%s1226_s1 + $0x160] sm:$0xff]   ;;  %v970_v2 = vld [vmem:[%s1226_s1 + $0x198] sm:$0xff]   ;;  %v975_v5 = vld [vmem:[%s1226_s1 + $0x168] sm:$0xff]  }
  0x12   :  { %863 = vmatprep.subr.bf16.mxu1 %v939_v17  ;;  %667 = vmatprep.mubr.bf16.mxu1 %v201_v51  ;;  %v202_v56 = vcombine.high %v198_v53, %v198_v53  ;;  %v972_v3 = vld [vmem:[%s1226_s1 + $0x1e0] sm:$0xff]   ;;  %v976_v7 = vld [vmem:[%s1226_s1 + $0x1e8] sm:$0xff]   ;;  %v979_v9 = vld [vmem:[%s1226_s1 + $0x170] sm:$0xff]   ;;  %v184_v17 = vrot.slane %v1122_v45, %v1102_v35 }
  0x13   :  { %v973_v4 = vld [vmem:[%s1226_s1 + $0x120] sm:$0xff]   ;;  %v977_v8 = vld [vmem:[%s1226_s1 + $0x128] sm:$0xff]   ;;  %v980_v11 = vld [vmem:[%s1226_s1 + $0x1f0] sm:$0xff]  }
  0x14   :  { %842 = vmatpush3.bf16.msra.mxu0 %v940_v18  ;;  %v974_v6 = vld [vmem:[%s1226_s1 + $0x1a0] sm:$0xff]   ;;  %v978_v10 = vld [vmem:[%s1226_s1 + $0x1a8] sm:$0xff]   ;;  %v981_v12 = vld [vmem:[%s1226_s1 + $0x130] sm:$0xff]  }
  0x15   :  { %864 = vmatpush3.bf16.msra.mxu1 %v941_v19  ;;  %843 = vmatprep.subr.bf16.mxu0 %v942_v20  ;;  %v983_v13 = vld [vmem:[%s1226_s1 + $0x178] sm:$0xff]   ;;  %v982_v14 = vld [vmem:[%s1226_s1 + $0x1b0] sm:$0xff]   ;;  %v200_v19 = vcombine.high %v184_v17, %v184_v17  ;;  %v8_v20 = vstv %s1228_s2 }
  0x16   :  { %865 = vmatprep.subr.bf16.mxu1 %v943_v21  ;;  %v984_v15 = vld [vmem:[%s1226_s1 + $0x1f8] sm:$0xff]   ;;  %9 = vst [vmem:[#allocation2] sm:$0x1] %v8_v20 }
  0x17   :  { %v985_v16 = vld [vmem:[%s1226_s1 + $0x138] sm:$0xff]  }
  0x18   :  { %844 = vmatpush3.bf16.msra.mxu0 %v944_v25  ;;  %v986_v18 = vld [vmem:[%s1226_s1 + $0x1b8] sm:$0xff]  }
  0x19   :  { %866 = vmatpush3.bf16.msra.mxu1 %v945_v26  ;;  %845 = vmatprep.subr.bf16.mxu0 %v946_v27 }
  0x1a   :  { %867 = vmatprep.subr.bf16.mxu1 %v947_v28 }
  0x1c   :  { %846 = vmatpush3.bf16.msra.mxu0 %v948_v31 }
  0x1d   :  { %868 = vmatpush3.bf16.msra.mxu1 %v949_v32  ;;  %847 = vmatprep.subr.bf16.mxu0 %v950_v33  ;;  %v767_v22 = vld [vmem:[#allocation2] ss:$0 sm:$0xff] }
  0x1e   :  { %869 = vmatprep.subr.bf16.mxu1 %v951_v34 }
  0x20   :  { %848 = vmatpush3.bf16.msra.mxu0 %v952_v36 }
  0x21   :  { %870 = vmatpush3.bf16.msra.mxu1 %v953_v37  ;;  %877 = vmatprep.subr.bf16.mxu0 %v955_v41 }
  0x22   :  { %899 = vmatprep.subr.bf16.mxu1 %v956_v42 }
  0x23   :  { %628 = vmatmul.mubr.bf16.vlgmr.msra.gmra.mrb[0].mxu0 %v177_v44 }
  0x24   :  { %878 = vmatpush3.bf16.msra.mxu0 %v957_v47  ;;  %668 = vmatmul.mubr.bf16.vlgmr.msra.gmra.mrb[0].mxu1 %v199_v49 }
  0x25   :  { %879 = vmatprep.subr.bf16.mxu0 %v959_v50  ;;  %900 = vmatpush3.bf16.msra.mxu1 %v958_v52 }
  0x26   :  { %707 = vmatprep.mubr.bf16.mxu0 %v198_v53  ;;  %901 = vmatprep.subr.bf16.mxu1 %v960_v54 }
  0x27   :  { %747 = vmatprep.mubr.bf16.mxu1 %v202_v56 }
  0x28   :  { %880 = vmatpush3.bf16.msra.mxu0 %v961_v55 }
  0x29   :  { %881 = vmatprep.subr.bf16.mxu0 %v963_v57  ;;  %902 = vmatpush3.bf16.msra.mxu1 %v962_v58 }
  0x2a   :  { %903 = vmatprep.subr.bf16.mxu1 %v964_v59 }
  0x2c   :  { %882 = vmatpush3.bf16.msra.mxu0 %v965_v60 }
  0x2d   :  { %883 = vmatprep.subr.bf16.mxu0 %v967_v61  ;;  %904 = vmatpush3.bf16.msra.mxu1 %v966_v62 }
  0x2e   :  { %905 = vmatprep.subr.bf16.mxu1 %v968_v63 }
  0x30   :  { %884 = vmatpush3.bf16.msra.mxu0 %v969_v0 }
  0x31   :  { %885 = vmatprep.subr.bf16.mxu0 %v971_v1  ;;  %906 = vmatpush3.bf16.msra.mxu1 %v970_v2 }
  0x32   :  { %907 = vmatprep.subr.bf16.mxu1 %v972_v3 }
  0x34   :  { %886 = vmatpush3.bf16.msra.mxu0 %v973_v4 }
  0x35   :  { %887 = vmatprep.subr.bf16.mxu0 %v975_v5  ;;  %908 = vmatpush3.bf16.msra.mxu1 %v974_v6 }
  0x36   :  { %909 = vmatprep.subr.bf16.mxu1 %v976_v7 }
  0x38   :  { %888 = vmatpush3.bf16.msra.mxu0 %v977_v8 }
  0x39   :  { %889 = vmatprep.subr.bf16.mxu0 %v979_v9  ;;  %910 = vmatpush3.bf16.msra.mxu1 %v978_v10 }
  0x3a   :  { %911 = vmatprep.subr.bf16.mxu1 %v980_v11 }
  0x3c   :  { %890 = vmatpush3.bf16.msra.mxu0 %v981_v12 }
  0x3d   :  { %891 = vmatprep.subr.bf16.mxu0 %v983_v13  ;;  %912 = vmatpush3.bf16.msra.mxu1 %v982_v14 }
  0x3e   :  { %913 = vmatprep.subr.bf16.mxu1 %v984_v15 }
  0x40   :  { %892 = vmatpush3.bf16.msra.mxu0 %v985_v16 }
  0x41   :  { %914 = vmatpush3.bf16.msra.mxu1 %v986_v18 }
  0x43   :  { %708 = vmatmul.mubr.bf16.vlgmr.msra.gmra.mrb[4].mxu0 %v184_v17 }
  0x44   :  { %748 = vmatmul.mubr.bf16.vlgmr.msra.gmra.mrb[4].mxu1 %v200_v19 }
  0xf6   :  { %v849_v21 = vpop.f32.mrb[0].mxu0 }
  0xf7   :  { %v850_v23 = vpop.f32.mrb[1].mxu0  ;;  %v871_v24 = vpop.f32.mrb[0].mxu1 }
  0xf8   :  { %v851_v25 = vadd.f32 %v850_v23, %v849_v21  ;;  %v852_v26 = vpop.f32.mrb[2].mxu0  ;;  %v872_v27 = vpop.f32.mrb[1].mxu1 }
  0xf9   :  { %v853_v28 = vpop.f32.mrb[3].mxu0  ;;  %v873_v30 = vadd.f32 %v872_v27, %v871_v24  ;;  %v874_v31 = vpop.f32.mrb[2].mxu1 }
  0xfa   :  { %v630_v29 = vadd.f32 %v851_v25, %v767_v22  ;;  %v875_v32 = vpop.f32.mrb[3].mxu1 }
  0xfc   :  { %v670_v33 = vadd.f32 %v873_v30, %v630_v29 }
 0x116   :  { %v893_v34 = vpop.f32.mrb[4].mxu0 }
 0x117   :  { %v894_v35 = vpop.f32.mrb[5].mxu0  ;;  %v915_v36 = vpop.f32.mrb[4].mxu1 }
 0x118   :  { %v895_v37 = vadd.f32 %v894_v35, %v893_v34  ;;  %v896_v38 = vpop.f32.mrb[6].mxu0  ;;  %v916_v39 = vpop.f32.mrb[5].mxu1 }
 0x119   :  { %v897_v40 = vpop.f32.mrb[7].mxu0  ;;  %v917_v42 = vadd.f32 %v916_v39, %v915_v36  ;;  %v918_v43 = vpop.f32.mrb[6].mxu1 }
 0x11a   :  { %v710_v41 = vadd.f32 %v895_v37, %v670_v33  ;;  %v919_v44 = vpop.f32.mrb[7].mxu1 }
 0x11c   :  { %v750_v45 = vadd.f32 %v917_v42, %v710_v41 }
 0x11e   :  { %v832_v46 = vmul.f32 -1.442695, %v750_v45 }
 0x120   :  { %987 = vpow2.f32 %v832_v46 }
 0x12a   :  { %v988_v47 = vpop.eup %987 }
 0x12b   :  { %v758_v48 = vadd.f32 1.0, %v988_v47 }
 0x12d   :  { %989 = vrcp.f32 %v758_v48 }
 0x137   :  { %v990_v49 = vpop.eup %989 }
 0x138   :  { %762 = vst.msk [vmem:[%s1229_s3] sm:$0x3] %vm761_vm0, %v990_v49 }

</bundles_post_ra>
